<compile_context>
chip_gen: v6e
topology: v6e:2x2x1
jax: 0.10.0
libtpu: 0.0.40
codegen_flags: <defaults>
</compile_context>

<pallas_src>
import functools

import jax
import jax.numpy as jnp
from jax.experimental import pallas as pl
from jax.experimental.pallas import tpu as pltpu


def _round_up(x, m):
    return ((x + m - 1) // m) * m


def regression_kernel(x_ref, w1_ref, b1_ref, w2_ref, b2_ref, o_ref):
    # Linear 1 (MXU matmul, f32 accumulate) + bias + ReLU (VPU, f32).
    h = jnp.dot(x_ref[...], w1_ref[...], preferred_element_type=jnp.float32)
    h = jnp.maximum(h + b1_ref[...], 0.0)
    # Linear 2 + bias + ReLU.  Output width = true out_size (no lane padding);
    # the resulting masked stores are cheaper than 16x more HBM store bytes.
    y = jnp.dot(h, w2_ref[...], preferred_element_type=jnp.float32)
    y = jnp.maximum(y + b2_ref[...], 0.0)
    o_ref[...] = y.astype(o_ref.dtype)


@functools.partial(jax.jit, static_argnames=("tile_m",))
def regression_forward(x, w1, b1, w2, b2, *, tile_m=4096):
    """ReLU(ReLU(x @ w1 + b1) @ w2 + b2).  All operands f32, (in, out) weights."""
    N, E = x.shape
    O = w2.shape[1]

    # Row tile: aim for ~2 grid steps (keeps both v7x TCs fed; near-free on
    # v5e/v6e), capped at tile_m rows per step for very large N.
    tm = min(tile_m, max(8, _round_up(pl.cdiv(N, 2), 8)))
    grid = (pl.cdiv(N, tm),)

    out = pl.pallas_call(
        regression_kernel,
        out_shape=jax.ShapeDtypeStruct((N, O), x.dtype),
        grid_spec=pltpu.PrefetchScalarGridSpec(
            num_scalar_prefetch=0,
            grid=grid,
            in_specs=[
                pl.BlockSpec((tm, E), lambda i: (i, 0)),  # x row tile (streamed)
                pl.BlockSpec((E, E), lambda i: (0, 0)),   # W1 (resident)
                pl.BlockSpec((1, E), lambda i: (0, 0)),   # b1 (resident)
                pl.BlockSpec((E, O), lambda i: (0, 0)),   # W2 (resident)
                pl.BlockSpec((1, O), lambda i: (0, 0)),   # b2 (resident)
            ],
            out_specs=pl.BlockSpec((tm, O), lambda i: (i, 0)),
        ),
        compiler_params=pltpu.CompilerParams(
            dimension_semantics=("parallel",),
        ),
    )(x, w1, b1, w2, b2)
    return out


def xavier_uniform(key, shape, dtype=jnp.float32):
    # nn.init.xavier_uniform_ on a (fan_out, fan_in) torch weight; the bound is
    # identical for the transposed (fan_in, fan_out) storage used here.
    fan_in, fan_out = shape[0], shape[1]
    bound = (6.0 / (fan_in + fan_out)) ** 0.5
    return jax.random.uniform(key, shape, dtype, minval=-bound, maxval=bound)


def linear_bias_init(key, fan_in, out_features, dtype=jnp.float32):
    # PyTorch nn.Linear default bias init: U(-1/sqrt(fan_in), 1/sqrt(fan_in)).
    bound = 1.0 / (fan_in ** 0.5)
    return jax.random.uniform(key, (1, out_features), dtype,
                              minval=-bound, maxval=bound)


if __name__ == "__main__":
    emb_size, out_size = 32, 8
    N = 2048  # node embeddings (rows); grid of 2 steps at tm=1024

    key = jax.random.PRNGKey(0)
    kx, kw1, kb1, kw2, kb2 = jax.random.split(key, 5)

    x = jax.random.normal(kx, (N, emb_size), jnp.float32)
    w1 = xavier_uniform(kw1, (emb_size, emb_size))   # stored as (in, out)
    b1 = linear_bias_init(kb1, emb_size, emb_size)
    w2 = xavier_uniform(kw2, (emb_size, out_size))   # stored as (in, out)
    b2 = linear_bias_init(kb2, emb_size, out_size)

    out = regression_forward(x, w1, b1, w2, b2)
    out = jax.block_until_ready(out)
    assert out.shape == (N, out_size)
    assert out.dtype == x.dtype

    # Pure f32 reference (tolerance covers MXU f32 accumulation differences).
    ref = jnp.maximum(jnp.maximum(x @ w1 + b1, 0.0) @ w2 + b2, 0.0)
    assert jnp.allclose(out, ref, atol=1e-2, rtol=1e-2), (
        float(jnp.max(jnp.abs(out - ref))))

    print("KERNEL_OK")
</pallas_src>

<mosaic_0001>
module attributes {stable_mosaic.version = 11 : i64} {
  func.func @regression_kernel(%arg0: i32, %arg1: memref<1024x32xf32, #tpu.memory_space<vmem>>, %arg2: memref<32x32xf32, #tpu.memory_space<vmem>>, %arg3: memref<1x32xf32, #tpu.memory_space<vmem>>, %arg4: memref<32x8xf32, #tpu.memory_space<vmem>>, %arg5: memref<1x8xf32, #tpu.memory_space<vmem>>, %arg6: memref<1024x8xf32, #tpu.memory_space<vmem>>) attributes {dimension_semantics = [#tpu.dimension_semantics<parallel>], iteration_bounds = array<i64: 2>, scalar_prefetch = 0 : i64, scratch_operands = 0 : i64, tpu.core_type = #tpu.core_type<tc>, window_params = [{transform_indices = @transform_0, window_bounds = array<i64: 1024, 32>}, {pipeline_mode = #tpu.pipeline_mode<synchronous>, transform_indices = @transform_1, window_bounds = array<i64: 32, 32>}, {pipeline_mode = #tpu.pipeline_mode<synchronous>, transform_indices = @transform_2, window_bounds = array<i64: 1, 32>}, {pipeline_mode = #tpu.pipeline_mode<synchronous>, transform_indices = @transform_3, window_bounds = array<i64: 32, 8>}, {pipeline_mode = #tpu.pipeline_mode<synchronous>, transform_indices = @transform_4, window_bounds = array<i64: 1, 8>}, {transform_indices = @transform_5, window_bounds = array<i64: 1024, 8>}]} {
    %c0 = arith.constant 0 : index
    %c0_0 = arith.constant 0 : index
    %0 = vector.load %arg1[%c0, %c0_0] : memref<1024x32xf32, #tpu.memory_space<vmem>>, vector<1024x32xf32>
    %c0_1 = arith.constant 0 : index
    %c0_2 = arith.constant 0 : index
    %1 = vector.load %arg2[%c0_1, %c0_2] : memref<32x32xf32, #tpu.memory_space<vmem>>, vector<32x32xf32>
    %cst = arith.constant dense<0.000000e+00> : vector<1024x32xf32>
    %2 = tpu.matmul %0, %1, %cst {dimension_numbers = #tpu.dot_dimension_numbers<[1], [0], [0], [1], [0, 0, 1, 1], [], []>} : vector<1024x32xf32>, vector<32x32xf32>, vector<1024x32xf32> -> vector<1024x32xf32>
    %c0_3 = arith.constant 0 : index
    %c0_4 = arith.constant 0 : index
    %3 = vector.load %arg3[%c0_3, %c0_4] : memref<1x32xf32, #tpu.memory_space<vmem>>, vector<1x32xf32>
    %4 = vector.broadcast %3 : vector<1x32xf32> to vector<1024x32xf32>
    %5 = arith.addf %2, %4 : vector<1024x32xf32>
    %cst_5 = arith.constant 0.000000e+00 : f32
    %6 = vector.broadcast %cst_5 : f32 to vector<1024x32xf32>
    %7 = arith.maximumf %5, %6 : vector<1024x32xf32>
    %c0_6 = arith.constant 0 : index
    %c0_7 = arith.constant 0 : index
    %8 = vector.load %arg4[%c0_6, %c0_7] : memref<32x8xf32, #tpu.memory_space<vmem>>, vector<32x8xf32>
    %cst_8 = arith.constant dense<0.000000e+00> : vector<1024x8xf32>
    %9 = tpu.matmul %7, %8, %cst_8 {dimension_numbers = #tpu.dot_dimension_numbers<[1], [0], [0], [1], [0, 0, 1, 1], [], []>} : vector<1024x32xf32>, vector<32x8xf32>, vector<1024x8xf32> -> vector<1024x8xf32>
    %c0_9 = arith.constant 0 : index
    %c0_10 = arith.constant 0 : index
    %10 = vector.load %arg5[%c0_9, %c0_10] : memref<1x8xf32, #tpu.memory_space<vmem>>, vector<1x8xf32>
    %11 = vector.broadcast %10 : vector<1x8xf32> to vector<1024x8xf32>
    %12 = arith.addf %9, %11 : vector<1024x8xf32>
    %cst_11 = arith.constant 0.000000e+00 : f32
    %13 = vector.broadcast %cst_11 : f32 to vector<1024x8xf32>
    %14 = arith.maximumf %12, %13 : vector<1024x8xf32>
    %c0_12 = arith.constant 0 : index
    %c0_13 = arith.constant 0 : index
    %15 = vector.load %arg6[%c0_12, %c0_13] : memref<1024x8xf32, #tpu.memory_space<vmem>>, vector<1024x8xf32>
    tpu.vector_store %arg6[%c0_12, %c0_13], %14 {strides = array<i32>} : memref<1024x8xf32, #tpu.memory_space<vmem>>, vector<1024x8xf32>,
    return
  }
  func.func @transform_0(%arg0: i32) -> (i32, i32) {
    %c0_i32 = arith.constant 0 : i32
    %c0_i32_0 = arith.constant 0 : i32
    return %arg0, %c0_i32 : i32, i32
  }
  func.func @transform_1(%arg0: i32) -> (i32, i32) {
    %c0_i32 = arith.constant 0 : i32
    %c0_i32_0 = arith.constant 0 : i32
    %c0_i32_1 = arith.constant 0 : i32
    return %c0_i32, %c0_i32_0 : i32, i32
  }
  func.func @transform_2(%arg0: i32) -> (i32, i32) {
    %c0_i32 = arith.constant 0 : i32
    %c0_i32_0 = arith.constant 0 : i32
    %c0_i32_1 = arith.constant 0 : i32
    return %c0_i32, %c0_i32_0 : i32, i32
  }
  func.func @transform_3(%arg0: i32) -> (i32, i32) {
    %c0_i32 = arith.constant 0 : i32
    %c0_i32_0 = arith.constant 0 : i32
    %c0_i32_1 = arith.constant 0 : i32
    return %c0_i32, %c0_i32_0 : i32, i32
  }
  func.func @transform_4(%arg0: i32) -> (i32, i32) {
    %c0_i32 = arith.constant 0 : i32
    %c0_i32_0 = arith.constant 0 : i32
    %c0_i32_1 = arith.constant 0 : i32
    return %c0_i32, %c0_i32_0 : i32, i32
  }
  func.func @transform_5(%arg0: i32) -> (i32, i32) {
    %c0_i32 = arith.constant 0 : i32
    %c0_i32_0 = arith.constant 0 : i32
    return %arg0, %c0_i32 : i32, i32
  }
}

</mosaic_0001>

<bundles_post_ra>
// kernel: regression_forward.1
= control target key start
LH: loop header
LB: loop body
LE: loop exit
PB: predicated region body
PF: predicated region fallthrough
CT: control target
= control target key end

     0   :  { %s3979_s18 = smov 0   ;;  %s4947_s0 = inlined_call_operand.vmem [shape: f32[2048,32], index: 0, kind: input, shape index: {}]   ;;  %s4948_s1 = inlined_call_operand.vmem [shape: f32[32,32], index: 1, kind: input, shape index: {}]   ;;  %s4949_s2 = inlined_call_operand.vmem [shape: f32[1,32], index: 2, kind: input, shape index: {}]   ;;  %s4950_s3 = inlined_call_operand.vmem [shape: f32[32,8], index: 3, kind: input, shape index: {}]   ;;  %s4951_s4 = inlined_call_operand.vmem [shape: f32[1,8], index: 4, kind: input, shape index: {}]   ;;  %s4952_s5 = inlined_call_operand.vmem [shape: f32[2048,8], index: 5, kind: output, shape index: {}]  }
   0x1 LB: > { %s2998_s19 = sadd.s32 4294967295, %s3947_s18   ;;  %p3002_p0 = scmp.ge.s32.totalorder %s3947_s18, 1  ;;  %s3947_s18 = sphi %s3979_s18, %s15_s18  }
   0x2   : > { %p188_p1 = scmp.lt.s32.totalorder %s3947_s18, 3 }
   0x4   : > { %p189_p2 = pnand %p3002_p0, %p188_p1 }
   0x5   : > { %s3003_s24 = sshll.u32 (!%p189_p2), %s2998_s19, 7 }
   0x6   : > { %192 = sbr.rel (%p189_p2) target bundleno = 672 (0x2a0), region = 40  ;;  %p217_p3 = scmp.lt.s32.totalorder (!%p189_p2), %s3003_s24, 255 }
   0xb   : > { %v359_v0 = vld [vmem:[%s4948_s1 + $0x18] sm:$0xff]  ;;  %v358_v1 = vld [vmem:[%s4948_s1 + $0x10] sm:$0xff]  ;;  %v357_v2 = vld [vmem:[%s4948_s1 + $0x8] sm:$0xff]  ;;  %s4954_s24 = smov (!%p217_p3, %s3003_s24), 255  ;;  %vm367_vm0 = vcmask 261120   ;;  %vm2813_vm1 = vcmask 64512  }
   0xc   : > { %3531 = vmatprep.subr.mxu0 %v359_v0  ;;  %v356_v3 = vld [vmem:[%s4948_s1] sm:$0xff]  ;;  %s3004_s29 = sshll.u32 %s4954_s24, 3  ;;  %v1588_v39 = vld [vmem:[%s4950_s3 + $0x18] sm:$0xff]  ;;  %v1587_v41 = vld [vmem:[%s4950_s3 + $0x10] sm:$0xff] }
   0xd   : > { %3532 = vmatpush3.msra.mxu0 %v359_v0  ;;  %s4007_s7 = scalar_lea.vmem %s4947_s0, %s3004_s29  ;;  %3731 = vmatprep.subr.mxu1 %v1588_v39  ;;  %v1586_v43 = vld [vmem:[%s4950_s3 + $0x8] sm:$0xff]  ;;  %v1585_v45 = vld [vmem:[%s4950_s3] sm:$0xff]  ;;  %s4491_s23 = scalar_lea.vmem %s4952_s5, %s3004_s29 }
   0xe   : > { %3533 = vmatprep.subr.mxu0 %v358_v1  ;;  %v228_v4 = vld [vmem:[%s4007_s7] sm:$0xff]  ;;  %v229_v5 = vld [vmem:[%s4007_s7 + $0x8] sm:$0xff]  ;;  %v230_v6 = vld [vmem:[%s4007_s7 + $0x10] sm:$0xff]  ;;  %3732 = vmatpush3.msra.mxu1 %v1588_v39 }
   0xf   : > { %3534 = vmatpush3.msra.mxu0 %v358_v1  ;;  %3539 = vmatprep.mubr.msk.f32.mxu0 %vm367_vm0, %v228_v4  ;;  %v231_v7 = vld [vmem:[%s4007_s7 + $0x18] sm:$0xff]  ;;  %v232_v8 = vld [vmem:[%s4007_s7 + $0x20] sm:$0xff]  ;;  %v233_v9 = vld [vmem:[%s4007_s7 + $0x28] sm:$0xff] }
  0x10   : > { %3535 = vmatprep.subr.mxu0 %v357_v2  ;;  %v234_v10 = vld [vmem:[%s4007_s7 + $0x30] sm:$0xff]  ;;  %v235_v11 = vld [vmem:[%s4007_s7 + $0x38] sm:$0xff]  ;;  %v236_v12 = vld [vmem:[%s4007_s7 + $0x40] sm:$0xff]  ;;  %3733 = vmatprep.subr.mxu1 %v1587_v41 }
  0x11   : > { %3536 = vmatpush3.msra.mxu0 %v357_v2  ;;  %v237_v13 = vld [vmem:[%s4007_s7 + $0x48] sm:$0xff]  ;;  %v238_v14 = vld [vmem:[%s4007_s7 + $0x50] sm:$0xff]  ;;  %v239_v15 = vld [vmem:[%s4007_s7 + $0x58] sm:$0xff]  ;;  %3734 = vmatpush3.msra.mxu1 %v1587_v41 }
  0x12   : > { %3537 = vmatprep.subr.mxu0 %v356_v3  ;;  %v240_v16 = vld [vmem:[%s4007_s7 + $0x60] sm:$0xff]  ;;  %v241_v17 = vld [vmem:[%s4007_s7 + $0x68] sm:$0xff]  ;;  %v242_v18 = vld [vmem:[%s4007_s7 + $0x70] sm:$0xff]  ;;  %3735 = vmatprep.subr.mxu1 %v1586_v43 }
  0x13   : > { %3538 = vmatpush3.msra.mxu0 %v356_v3  ;;  %v243_v19 = vld [vmem:[%s4007_s7 + $0x78] sm:$0xff]  ;;  %v244_v20 = vld [vmem:[%s4007_s7 + $0x80] sm:$0xff]  ;;  %v245_v21 = vld [vmem:[%s4007_s7 + $0x88] sm:$0xff]  ;;  %3736 = vmatpush3.msra.mxu1 %v1586_v43 }
  0x14   : > { %3540 = vmatmul.mubr.msk.f32.vlgmr.msra.gmra.mxu0 %vm367_vm0, %v229_v5  ;;  %v246_v22 = vld [vmem:[%s4007_s7 + $0x90] sm:$0xff]  ;;  %v247_v23 = vld [vmem:[%s4007_s7 + $0x98] sm:$0xff]  ;;  %v248_v24 = vld [vmem:[%s4007_s7 + $0xa0] sm:$0xff]  ;;  %3737 = vmatprep.subr.mxu1 %v1585_v45 }
  0x15   : > { %3542 = vmatprep.mubr.msk.f32.mxu0 %vm367_vm0, %v230_v6  ;;  %v249_v25 = vld [vmem:[%s4007_s7 + $0xa8] sm:$0xff]  ;;  %v250_v26 = vld [vmem:[%s4007_s7 + $0xb0] sm:$0xff]  ;;  %v251_v27 = vld [vmem:[%s4007_s7 + $0xb8] sm:$0xff]  ;;  %3738 = vmatpush3.msra.mxu1 %v1585_v45 }
  0x16   : > { %v252_v28 = vld [vmem:[%s4007_s7 + $0xc0] sm:$0xff]  ;;  %v253_v29 = vld [vmem:[%s4007_s7 + $0xc8] sm:$0xff]  ;;  %v254_v30 = vld [vmem:[%s4007_s7 + $0xd0] sm:$0xff] }
  0x17   : > { %v255_v31 = vld [vmem:[%s4007_s7 + $0xd8] sm:$0xff]  ;;  %v256_v32 = vld [vmem:[%s4007_s7 + $0xe0] sm:$0xff]  ;;  %v257_v33 = vld [vmem:[%s4007_s7 + $0xe8] sm:$0xff] }
  0x18   : > { %3543 = vmatmul.mubr.msk.f32.gmra.mxu0 %vm367_vm0, %v231_v7  ;;  %v258_v34 = vld [vmem:[%s4007_s7 + $0xf0] sm:$0xff]  ;;  %v259_v35 = vld [vmem:[%s4007_s7 + $0xf8] sm:$0xff]  ;;  %v260_v36 = vld [vmem:[%s4007_s7 + $0x100] sm:$0xff] }
  0x19   : > { %3545 = vmatprep.mubr.msk.f32.mxu0 %vm367_vm0, %v232_v8  ;;  %v261_v37 = vld [vmem:[%s4007_s7 + $0x108] sm:$0xff]  ;;  %v262_v38 = vld [vmem:[%s4007_s7 + $0x110] sm:$0xff]  ;;  %v263_v40 = vld [vmem:[%s4007_s7 + $0x118] sm:$0xff] }
  0x1a   : > { %v264_v42 = vld [vmem:[%s4007_s7 + $0x120] sm:$0xff]  ;;  %v265_v44 = vld [vmem:[%s4007_s7 + $0x128] sm:$0xff]  ;;  %v266_v46 = vld [vmem:[%s4007_s7 + $0x130] sm:$0xff] }
  0x1b   : > { %v267_v47 = vld [vmem:[%s4007_s7 + $0x138] sm:$0xff]  ;;  %v268_v48 = vld [vmem:[%s4007_s7 + $0x140] sm:$0xff]  ;;  %v269_v49 = vld [vmem:[%s4007_s7 + $0x148] sm:$0xff] }
  0x1c   : > { %3546 = vmatmul.mubr.msk.f32.gmra.mxu0 %vm367_vm0, %v233_v9  ;;  %v270_v50 = vld [vmem:[%s4007_s7 + $0x150] sm:$0xff]  ;;  %v271_v51 = vld [vmem:[%s4007_s7 + $0x158] sm:$0xff]  ;;  %v272_v52 = vld [vmem:[%s4007_s7 + $0x160] sm:$0xff] }
  0x1d   : > { %3548 = vmatprep.mubr.msk.f32.mxu0 %vm367_vm0, %v234_v10  ;;  %v273_v53 = vld [vmem:[%s4007_s7 + $0x168] sm:$0xff]  ;;  %v274_v54 = vld [vmem:[%s4007_s7 + $0x170] sm:$0xff]  ;;  %v275_v55 = vld [vmem:[%s4007_s7 + $0x178] sm:$0xff] }
  0x1e   : > { %v276_v56 = vld [vmem:[%s4007_s7 + $0x180] sm:$0xff]  ;;  %v277_v57 = vld [vmem:[%s4007_s7 + $0x188] sm:$0xff]  ;;  %v278_v58 = vld [vmem:[%s4007_s7 + $0x190] sm:$0xff] }
  0x1f   : > { %v279_v59 = vld [vmem:[%s4007_s7 + $0x198] sm:$0xff]  ;;  %v280_v60 = vld [vmem:[%s4007_s7 + $0x1a0] sm:$0xff]  ;;  %v281_v61 = vld [vmem:[%s4007_s7 + $0x1a8] sm:$0xff] }
  0x20   : > { %3549 = vmatmul.mubr.msk.f32.gmra.mxu0 %vm367_vm0, %v235_v11  ;;  %v282_v62 = vld [vmem:[%s4007_s7 + $0x1b0] sm:$0xff]  ;;  %v283_v63 = vld [vmem:[%s4007_s7 + $0x1b8] sm:$0xff]  ;;  %v284_v0 = vld [vmem:[%s4007_s7 + $0x1c0] sm:$0xff] }
  0x21   : > { %3551 = vmatprep.mubr.msk.f32.mxu0 %vm367_vm0, %v236_v12  ;;  %v285_v1 = vld [vmem:[%s4007_s7 + $0x1c8] sm:$0xff]  ;;  %v286_v2 = vld [vmem:[%s4007_s7 + $0x1d0] sm:$0xff]  ;;  %v287_v3 = vld [vmem:[%s4007_s7 + $0x1d8] sm:$0xff] }
  0x22   : > { %v288_v4 = vld [vmem:[%s4007_s7 + $0x1e0] sm:$0xff]  ;;  %v289_v5 = vld [vmem:[%s4007_s7 + $0x1e8] sm:$0xff]  ;;  %v290_v6 = vld [vmem:[%s4007_s7 + $0x1f0] sm:$0xff] }
  0x23   : > { %v291_v7 = vld [vmem:[%s4007_s7 + $0x1f8] sm:$0xff]  ;;  %v292_v8 = vld [vmem:[%s4007_s7 + $0x200] sm:$0xff]  ;;  %v293_v9 = vld [vmem:[%s4007_s7 + $0x208] sm:$0xff] }
  0x24   : > { %3552 = vmatmul.mubr.msk.f32.gmra.mxu0 %vm367_vm0, %v237_v13  ;;  %v294_v10 = vld [vmem:[%s4007_s7 + $0x210] sm:$0xff]  ;;  %v295_v11 = vld [vmem:[%s4007_s7 + $0x218] sm:$0xff]  ;;  %v296_v12 = vld [vmem:[%s4007_s7 + $0x220] sm:$0xff] }
  0x25   : > { %3554 = vmatprep.mubr.msk.f32.mxu0 %vm367_vm0, %v238_v14  ;;  %v297_v13 = vld [vmem:[%s4007_s7 + $0x228] sm:$0xff]  ;;  %v298_v14 = vld [vmem:[%s4007_s7 + $0x230] sm:$0xff]  ;;  %v323_v39 = vld [vmem:[%s4007_s7 + $0x2f8] sm:$0xff] }
  0x26   : > { %v325_v41 = vld [vmem:[%s4007_s7 + $0x308] sm:$0xff]  ;;  %v4220_v43 = vld [vmem:[%s4949_s2] ss:$0 sm:$0xff]  ;;  %v327_v45 = vld [vmem:[%s4007_s7 + $0x318] sm:$0xff] }
  0x28   : > { %3555 = vmatmul.mubr.msk.f32.gmra.mxu0 %vm367_vm0, %v239_v15  ;;  %v299_v15 = vld [vmem:[%s4007_s7 + $0x238] sm:$0xff] }
  0x29   : > { %3557 = vmatprep.mubr.msk.f32.mxu0 %vm367_vm0, %v240_v16  ;;  %v300_v16 = vld [vmem:[%s4007_s7 + $0x240] sm:$0xff] }
  0x2c   : > { %3558 = vmatmul.mubr.msk.f32.gmra.mxu0 %vm367_vm0, %v241_v17  ;;  %v301_v17 = vld [vmem:[%s4007_s7 + $0x248] sm:$0xff] }
  0x2d   : > { %3560 = vmatprep.mubr.msk.f32.mxu0 %vm367_vm0, %v242_v18  ;;  %v302_v18 = vld [vmem:[%s4007_s7 + $0x250] sm:$0xff] }
  0x30   : > { %3561 = vmatmul.mubr.msk.f32.gmra.mxu0 %vm367_vm0, %v243_v19  ;;  %v303_v19 = vld [vmem:[%s4007_s7 + $0x258] sm:$0xff] }
  0x31   : > { %3563 = vmatprep.mubr.msk.f32.mxu0 %vm367_vm0, %v244_v20  ;;  %v304_v20 = vld [vmem:[%s4007_s7 + $0x260] sm:$0xff] }
  0x34   : > { %3564 = vmatmul.mubr.msk.f32.gmra.mxu0 %vm367_vm0, %v245_v21  ;;  %v305_v21 = vld [vmem:[%s4007_s7 + $0x268] sm:$0xff] }
  0x35   : > { %3566 = vmatprep.mubr.msk.f32.mxu0 %vm367_vm0, %v246_v22  ;;  %v306_v22 = vld [vmem:[%s4007_s7 + $0x270] sm:$0xff] }
  0x38   : > { %3567 = vmatmul.mubr.msk.f32.gmra.mxu0 %vm367_vm0, %v247_v23  ;;  %v307_v23 = vld [vmem:[%s4007_s7 + $0x278] sm:$0xff] }
  0x39   : > { %3569 = vmatprep.mubr.msk.f32.mxu0 %vm367_vm0, %v248_v24  ;;  %v308_v24 = vld [vmem:[%s4007_s7 + $0x280] sm:$0xff] }
  0x3c   : > { %3570 = vmatmul.mubr.msk.f32.gmra.mxu0 %vm367_vm0, %v249_v25  ;;  %v309_v25 = vld [vmem:[%s4007_s7 + $0x288] sm:$0xff] }
  0x3d   : > { %3572 = vmatprep.mubr.msk.f32.mxu0 %vm367_vm0, %v250_v26  ;;  %v310_v26 = vld [vmem:[%s4007_s7 + $0x290] sm:$0xff] }
  0x40   : > { %3573 = vmatmul.mubr.msk.f32.gmra.mxu0 %vm367_vm0, %v251_v27  ;;  %v311_v27 = vld [vmem:[%s4007_s7 + $0x298] sm:$0xff] }
  0x41   : > { %3575 = vmatprep.mubr.msk.f32.mxu0 %vm367_vm0, %v252_v28  ;;  %v312_v28 = vld [vmem:[%s4007_s7 + $0x2a0] sm:$0xff] }
  0x44   : > { %3576 = vmatmul.mubr.msk.f32.gmra.mxu0 %vm367_vm0, %v253_v29  ;;  %v313_v29 = vld [vmem:[%s4007_s7 + $0x2a8] sm:$0xff] }
  0x45   : > { %3578 = vmatprep.mubr.msk.f32.mxu0 %vm367_vm0, %v254_v30  ;;  %v314_v30 = vld [vmem:[%s4007_s7 + $0x2b0] sm:$0xff] }
  0x48   : > { %3579 = vmatmul.mubr.msk.f32.gmra.mxu0 %vm367_vm0, %v255_v31  ;;  %v315_v31 = vld [vmem:[%s4007_s7 + $0x2b8] sm:$0xff] }
  0x49   : > { %3581 = vmatprep.mubr.msk.f32.mxu0 %vm367_vm0, %v256_v32  ;;  %v316_v32 = vld [vmem:[%s4007_s7 + $0x2c0] sm:$0xff] }
  0x4c   : > { %3582 = vmatmul.mubr.msk.f32.gmra.mxu0 %vm367_vm0, %v257_v33  ;;  %v317_v33 = vld [vmem:[%s4007_s7 + $0x2c8] sm:$0xff] }
  0x4d   : > { %3584 = vmatprep.mubr.msk.f32.mxu0 %vm367_vm0, %v258_v34  ;;  %v318_v34 = vld [vmem:[%s4007_s7 + $0x2d0] sm:$0xff] }
  0x50   : > { %3585 = vmatmul.mubr.msk.f32.gmra.mxu0 %vm367_vm0, %v259_v35  ;;  %v319_v35 = vld [vmem:[%s4007_s7 + $0x2d8] sm:$0xff] }
  0x51   : > { %3587 = vmatprep.mubr.msk.f32.mxu0 %vm367_vm0, %v260_v36  ;;  %v320_v36 = vld [vmem:[%s4007_s7 + $0x2e0] sm:$0xff] }
  0x54   : > { %3588 = vmatmul.mubr.msk.f32.gmra.mxu0 %vm367_vm0, %v261_v37  ;;  %v321_v37 = vld [vmem:[%s4007_s7 + $0x2e8] sm:$0xff] }
  0x55   : > { %3590 = vmatprep.mubr.msk.f32.mxu0 %vm367_vm0, %v262_v38  ;;  %v322_v38 = vld [vmem:[%s4007_s7 + $0x2f0] sm:$0xff] }
  0x58   : > { %3591 = vmatmul.mubr.msk.f32.gmra.mxu0 %vm367_vm0, %v263_v40  ;;  %v324_v40 = vld [vmem:[%s4007_s7 + $0x300] sm:$0xff] }
  0x59   : > { %3593 = vmatprep.mubr.msk.f32.mxu0 %vm367_vm0, %v264_v42  ;;  %v326_v42 = vld [vmem:[%s4007_s7 + $0x310] sm:$0xff] }
  0x5c   : > { %3594 = vmatmul.mubr.msk.f32.gmra.mxu0 %vm367_vm0, %v265_v44 }
  0x5d   : > { %3596 = vmatprep.mubr.msk.f32.mxu0 %vm367_vm0, %v266_v46 }
  0x60   : > { %3597 = vmatmul.mubr.msk.f32.gmra.mxu0 %vm367_vm0, %v267_v47 }
  0x61   : > { %3599 = vmatprep.mubr.msk.f32.mxu0 %vm367_vm0, %v268_v48  ;;  %v328_v48 = vld [vmem:[%s4007_s7 + $0x320] sm:$0xff] }
  0x64   : > { %3600 = vmatmul.mubr.msk.f32.gmra.mxu0 %vm367_vm0, %v269_v49 }
  0x65   : > { %3602 = vmatprep.mubr.msk.f32.mxu0 %vm367_vm0, %v270_v50 }
  0x68   : > { %3603 = vmatmul.mubr.msk.f32.gmra.mxu0 %vm367_vm0, %v271_v51 }
  0x69   : > { %3605 = vmatprep.mubr.msk.f32.mxu0 %vm367_vm0, %v272_v52  ;;  %v329_v52 = vld [vmem:[%s4007_s7 + $0x328] sm:$0xff] }
  0x6c   : > { %3606 = vmatmul.mubr.msk.f32.gmra.mxu0 %vm367_vm0, %v273_v53 }
  0x6d   : > { %3608 = vmatprep.mubr.msk.f32.mxu0 %vm367_vm0, %v274_v54 }
  0x70   : > { %3609 = vmatmul.mubr.msk.f32.gmra.mxu0 %vm367_vm0, %v275_v55 }
  0x71   : > { %3611 = vmatprep.mubr.msk.f32.mxu0 %vm367_vm0, %v276_v56  ;;  %v330_v56 = vld [vmem:[%s4007_s7 + $0x330] sm:$0xff] }
  0x74   : > { %3612 = vmatmul.mubr.msk.f32.gmra.mxu0 %vm367_vm0, %v277_v57 }
  0x75   : > { %3614 = vmatprep.mubr.msk.f32.mxu0 %vm367_vm0, %v278_v58 }
  0x78   : > { %3615 = vmatmul.mubr.msk.f32.gmra.mxu0 %vm367_vm0, %v279_v59 }
  0x79   : > { %3617 = vmatprep.mubr.msk.f32.mxu0 %vm367_vm0, %v280_v60  ;;  %v331_v60 = vld [vmem:[%s4007_s7 + $0x338] sm:$0xff] }
  0x7c   : > { %3618 = vmatmul.mubr.msk.f32.gmra.mxu0 %vm367_vm0, %v281_v61 }
  0x7d   : > { %3620 = vmatprep.mubr.msk.f32.mxu0 %vm367_vm0, %v282_v62 }
  0x80   : > { %3621 = vmatmul.mubr.msk.f32.gmra.mxu0 %vm367_vm0, %v283_v63 }
  0x81   : > { %3623 = vmatprep.mubr.msk.f32.mxu0 %vm367_vm0, %v284_v0  ;;  %v332_v0 = vld [vmem:[%s4007_s7 + $0x340] sm:$0xff] }
  0x84   : > { %3624 = vmatmul.mubr.msk.f32.gmra.mxu0 %vm367_vm0, %v285_v1 }
  0x85   : > { %3626 = vmatprep.mubr.msk.f32.mxu0 %vm367_vm0, %v286_v2 }
  0x88   : > { %3627 = vmatmul.mubr.msk.f32.gmra.mxu0 %vm367_vm0, %v287_v3 }
  0x89   : > { %3629 = vmatprep.mubr.msk.f32.mxu0 %vm367_vm0, %v288_v4  ;;  %v333_v4 = vld [vmem:[%s4007_s7 + $0x348] sm:$0xff] }
  0x8c   : > { %3630 = vmatmul.mubr.msk.f32.gmra.mxu0 %vm367_vm0, %v289_v5 }
  0x8d   : > { %3632 = vmatprep.mubr.msk.f32.mxu0 %vm367_vm0, %v290_v6 }
  0x90   : > { %3633 = vmatmul.mubr.msk.f32.gmra.mxu0 %vm367_vm0, %v291_v7 }
  0x91   : > { %3635 = vmatprep.mubr.msk.f32.mxu0 %vm367_vm0, %v292_v8  ;;  %v334_v8 = vld [vmem:[%s4007_s7 + $0x350] sm:$0xff] }
  0x94   : > { %3636 = vmatmul.mubr.msk.f32.gmra.mxu0 %vm367_vm0, %v293_v9 }
  0x95   : > { %3638 = vmatprep.mubr.msk.f32.mxu0 %vm367_vm0, %v294_v10 }
  0x98   : > { %3639 = vmatmul.mubr.msk.f32.gmra.mxu0 %vm367_vm0, %v295_v11 }
  0x99   : > { %3641 = vmatprep.mubr.msk.f32.mxu0 %vm367_vm0, %v296_v12  ;;  %v335_v12 = vld [vmem:[%s4007_s7 + $0x358] sm:$0xff] }
  0x9c   : > { %3642 = vmatmul.mubr.msk.f32.gmra.mxu0 %vm367_vm0, %v297_v13 }
  0x9d   : > { %3644 = vmatprep.mubr.msk.f32.mxu0 %vm367_vm0, %v298_v14 }
  0xa0   : > { %3645 = vmatmul.mubr.msk.f32.gmra.mxu0 %vm367_vm0, %v299_v15 }
  0xa1   : > { %3647 = vmatprep.mubr.msk.f32.mxu0 %vm367_vm0, %v300_v16  ;;  %v336_v16 = vld [vmem:[%s4007_s7 + $0x360] sm:$0xff] }
  0xa4   : > { %3648 = vmatmul.mubr.msk.f32.gmra.mxu0 %vm367_vm0, %v301_v17 }
  0xa5   : > { %3650 = vmatprep.mubr.msk.f32.mxu0 %vm367_vm0, %v302_v18 }
  0xa8   : > { %3651 = vmatmul.mubr.msk.f32.gmra.mxu0 %vm367_vm0, %v303_v19 }
  0xa9   : > { %3653 = vmatprep.mubr.msk.f32.mxu0 %vm367_vm0, %v304_v20  ;;  %v337_v20 = vld [vmem:[%s4007_s7 + $0x368] sm:$0xff] }
  0xac   : > { %3654 = vmatmul.mubr.msk.f32.gmra.mxu0 %vm367_vm0, %v305_v21 }
  0xad   : > { %3656 = vmatprep.mubr.msk.f32.mxu0 %vm367_vm0, %v306_v22 }
  0xb0   : > { %3657 = vmatmul.mubr.msk.f32.gmra.mxu0 %vm367_vm0, %v307_v23 }
  0xb1   : > { %3659 = vmatprep.mubr.msk.f32.mxu0 %vm367_vm0, %v308_v24  ;;  %v338_v24 = vld [vmem:[%s4007_s7 + $0x370] sm:$0xff] }
  0xb4   : > { %3660 = vmatmul.mubr.msk.f32.gmra.mxu0 %vm367_vm0, %v309_v25 }
  0xb5   : > { %3662 = vmatprep.mubr.msk.f32.mxu0 %vm367_vm0, %v310_v26 }
  0xb8   : > { %3663 = vmatmul.mubr.msk.f32.gmra.mxu0 %vm367_vm0, %v311_v27 }
  0xb9   : > { %3665 = vmatprep.mubr.msk.f32.mxu0 %vm367_vm0, %v312_v28  ;;  %v339_v28 = vld [vmem:[%s4007_s7 + $0x378] sm:$0xff] }
  0xbc   : > { %3666 = vmatmul.mubr.msk.f32.gmra.mxu0 %vm367_vm0, %v313_v29 }
  0xbd   : > { %3668 = vmatprep.mubr.msk.f32.mxu0 %vm367_vm0, %v314_v30 }
  0xc0   : > { %3669 = vmatmul.mubr.msk.f32.gmra.mxu0 %vm367_vm0, %v315_v31 }
  0xc1   : > { %3671 = vmatprep.mubr.msk.f32.mxu0 %vm367_vm0, %v316_v32  ;;  %v340_v32 = vld [vmem:[%s4007_s7 + $0x380] sm:$0xff] }
  0xc4   : > { %3672 = vmatmul.mubr.msk.f32.gmra.mxu0 %vm367_vm0, %v317_v33 }
  0xc5   : > { %3674 = vmatprep.mubr.msk.f32.mxu0 %vm367_vm0, %v318_v34 }
  0xc8   : > { %3675 = vmatmul.mubr.msk.f32.gmra.mxu0 %vm367_vm0, %v319_v35 }
  0xc9   : > { %3677 = vmatprep.mubr.msk.f32.mxu0 %vm367_vm0, %v320_v36  ;;  %v341_v36 = vld [vmem:[%s4007_s7 + $0x388] sm:$0xff] }
  0xcc   : > { %3678 = vmatmul.mubr.msk.f32.gmra.mxu0 %vm367_vm0, %v321_v37 }
  0xcd   : > { %3680 = vmatprep.mubr.msk.f32.mxu0 %vm367_vm0, %v322_v38 }
  0xd0   : > { %3681 = vmatmul.mubr.msk.f32.gmra.mxu0 %vm367_vm0, %v323_v39 }
  0xd1   : > { %3683 = vmatprep.mubr.msk.f32.mxu0 %vm367_vm0, %v324_v40  ;;  %v342_v40 = vld [vmem:[%s4007_s7 + $0x390] sm:$0xff] }
  0xd4   : > { %v3541_v44 = vpop.f32.mrf.mxu0  ;;  %3684 = vmatmul.mubr.msk.f32.gmra.mxu0 %vm367_vm0, %v325_v41 }
  0xd5   : > { %3686 = vmatprep.mubr.msk.f32.mxu0 %vm367_vm0, %v326_v42  ;;  %v824_v46 = vadd.f32 %v3541_v44, %v4220_v43 }
  0xd6   : > { %v818_v47 = vpop.f32.mrf.mxu0 }
  0xd7   : > { %v819_v49 = vadd.f32 %v4220_v43, %v818_v47  ;;  %v1458_v53 = vmax.f32 %v824_v46, 0.0 }
  0xd8   : > { %v3544_v50 = vpop.f32.mrf.mxu0  ;;  %3687 = vmatmul.mubr.msk.f32.gmra.mxu0 %vm367_vm0, %v327_v45  ;;  %v343_v45 = vld [vmem:[%s4007_s7 + $0x398] sm:$0xff] }
  0xd9   : > { %3689 = vmatprep.mubr.msk.f32.mxu0 %vm367_vm0, %v328_v48  ;;  %v1457_v51 = vmax.f32 %v819_v49, 0.0  ;;  %v834_v54 = vadd.f32 %v3544_v50, %v4220_v43  ;;  %v344_v49 = vld [vmem:[%s4007_s7 + $0x3a0] sm:$0xff] }
  0xda   : > { %v828_v55 = vpop.f32.mrf.mxu0 }
  0xdb   : > { %v829_v57 = vadd.f32 %v4220_v43, %v828_v55  ;;  %3739 = vmatprep.mubr.msk.f32.mxu1 %vm367_vm0, %v1457_v51  ;;  %v1460_v61 = vmax.f32 %v834_v54, 0.0 }
  0xdc   : > { %v3547_v58 = vpop.f32.mrf.mxu0  ;;  %3690 = vmatmul.mubr.msk.f32.gmra.mxu0 %vm367_vm0, %v329_v52  ;;  %3740 = vmatmul.mubr.msk.f32.vlgmr.msra.gmra.mxu1 %vm367_vm0, %v1458_v53  ;;  %v345_v53 = vld [vmem:[%s4007_s7 + $0x3a8] sm:$0xff] }
  0xdd   : > { %v1459_v59 = vmax.f32 %v829_v57, 0.0  ;;  %3692 = vmatprep.mubr.msk.f32.mxu0 %vm367_vm0, %v330_v56  ;;  %v844_v62 = vadd.f32 %v3547_v58, %v4220_v43  ;;  %v346_v57 = vld [vmem:[%s4007_s7 + $0x3b0] sm:$0xff] }
  0xde   : > { %v838_v63 = vpop.f32.mrf.mxu0 }
  0xdf   : > { %v839_v1 = vadd.f32 %v4220_v43, %v838_v63  ;;  %3742 = vmatprep.mubr.msk.f32.mxu1 %vm367_vm0, %v1459_v59  ;;  %v1462_v5 = vmax.f32 %v844_v62, 0.0 }
  0xe0   : > { %v3550_v2 = vpop.f32.mrf.mxu0  ;;  %3693 = vmatmul.mubr.msk.f32.gmra.mxu0 %vm367_vm0, %v331_v60  ;;  %3743 = vmatmul.mubr.msk.f32.gmra.mxu1 %vm367_vm0, %v1460_v61  ;;  %v347_v61 = vld [vmem:[%s4007_s7 + $0x3b8] sm:$0xff] }
  0xe1   : > { %v1461_v3 = vmax.f32 %v839_v1, 0.0  ;;  %3695 = vmatprep.mubr.msk.f32.mxu0 %vm367_vm0, %v332_v0  ;;  %v854_v6 = vadd.f32 %v3550_v2, %v4220_v43  ;;  %v348_v1 = vld [vmem:[%s4007_s7 + $0x3c0] sm:$0xff] }
  0xe2   : > { %v848_v7 = vpop.f32.mrf.mxu0 }
  0xe3   : > { %v849_v9 = vadd.f32 %v4220_v43, %v848_v7  ;;  %3745 = vmatprep.mubr.msk.f32.mxu1 %vm367_vm0, %v1461_v3  ;;  %v1464_v13 = vmax.f32 %v854_v6, 0.0 }
  0xe4   : > { %v3553_v10 = vpop.f32.mrf.mxu0  ;;  %3696 = vmatmul.mubr.msk.f32.gmra.mxu0 %vm367_vm0, %v333_v4  ;;  %3746 = vmatmul.mubr.msk.f32.gmra.mxu1 %vm367_vm0, %v1462_v5  ;;  %v349_v5 = vld [vmem:[%s4007_s7 + $0x3c8] sm:$0xff] }
  0xe5   : > { %v1463_v11 = vmax.f32 %v849_v9, 0.0  ;;  %3698 = vmatprep.mubr.msk.f32.mxu0 %vm367_vm0, %v334_v8  ;;  %v864_v14 = vadd.f32 %v3553_v10, %v4220_v43  ;;  %v350_v9 = vld [vmem:[%s4007_s7 + $0x3d0] sm:$0xff] }
  0xe6   : > { %v858_v15 = vpop.f32.mrf.mxu0 }
  0xe7   : > { %v859_v17 = vadd.f32 %v4220_v43, %v858_v15  ;;  %3748 = vmatprep.mubr.msk.f32.mxu1 %vm367_vm0, %v1463_v11  ;;  %v1466_v21 = vmax.f32 %v864_v14, 0.0 }
  0xe8   : > { %v3556_v18 = vpop.f32.mrf.mxu0  ;;  %3699 = vmatmul.mubr.msk.f32.gmra.mxu0 %vm367_vm0, %v335_v12  ;;  %3749 = vmatmul.mubr.msk.f32.gmra.mxu1 %vm367_vm0, %v1464_v13  ;;  %v351_v13 = vld [vmem:[%s4007_s7 + $0x3d8] sm:$0xff] }
  0xe9   : > { %v1465_v19 = vmax.f32 %v859_v17, 0.0  ;;  %3701 = vmatprep.mubr.msk.f32.mxu0 %vm367_vm0, %v336_v16  ;;  %v874_v22 = vadd.f32 %v3556_v18, %v4220_v43  ;;  %v352_v17 = vld [vmem:[%s4007_s7 + $0x3e0] sm:$0xff] }
  0xea   : > { %v868_v23 = vpop.f32.mrf.mxu0 }
  0xeb   : > { %v869_v25 = vadd.f32 %v4220_v43, %v868_v23  ;;  %3751 = vmatprep.mubr.msk.f32.mxu1 %vm367_vm0, %v1465_v19  ;;  %v1468_v29 = vmax.f32 %v874_v22, 0.0 }
  0xec   : > { %v3559_v26 = vpop.f32.mrf.mxu0  ;;  %3702 = vmatmul.mubr.msk.f32.gmra.mxu0 %vm367_vm0, %v337_v20  ;;  %3752 = vmatmul.mubr.msk.f32.gmra.mxu1 %vm367_vm0, %v1466_v21  ;;  %v353_v21 = vld [vmem:[%s4007_s7 + $0x3e8] sm:$0xff] }
  0xed   : > { %v1467_v27 = vmax.f32 %v869_v25, 0.0  ;;  %3704 = vmatprep.mubr.msk.f32.mxu0 %vm367_vm0, %v338_v24  ;;  %v884_v30 = vadd.f32 %v3559_v26, %v4220_v43  ;;  %v354_v25 = vld [vmem:[%s4007_s7 + $0x3f0] sm:$0xff] }
  0xee   : > { %v878_v31 = vpop.f32.mrf.mxu0 }
  0xef   : > { %v879_v33 = vadd.f32 %v4220_v43, %v878_v31  ;;  %3754 = vmatprep.mubr.msk.f32.mxu1 %vm367_vm0, %v1467_v27  ;;  %v1470_v37 = vmax.f32 %v884_v30, 0.0 }
  0xf0   : > { %v3562_v34 = vpop.f32.mrf.mxu0  ;;  %3705 = vmatmul.mubr.msk.f32.gmra.mxu0 %vm367_vm0, %v339_v28  ;;  %3755 = vmatmul.mubr.msk.f32.gmra.mxu1 %vm367_vm0, %v1468_v29  ;;  %v355_v29 = vld [vmem:[%s4007_s7 + $0x3f8] sm:$0xff] }
  0xf1   : > { %v1469_v35 = vmax.f32 %v879_v33, 0.0  ;;  %3707 = vmatprep.mubr.msk.f32.mxu0 %vm367_vm0, %v340_v32  ;;  %v894_v38 = vadd.f32 %v3562_v34, %v4220_v43 }
  0xf2   : > { %v888_v39 = vpop.f32.mrf.mxu0 }
  0xf3   : > { %v889_v41 = vadd.f32 %v4220_v43, %v888_v39  ;;  %3757 = vmatprep.mubr.msk.f32.mxu1 %vm367_vm0, %v1469_v35  ;;  %v1472_v46 = vmax.f32 %v894_v38, 0.0 }
  0xf4   : > { %v3565_v42 = vpop.f32.mrf.mxu0  ;;  %3708 = vmatmul.mubr.msk.f32.gmra.mxu0 %vm367_vm0, %v341_v36  ;;  %3758 = vmatmul.mubr.msk.f32.gmra.mxu1 %vm367_vm0, %v1470_v37 }
  0xf5   : > { %v1471_v44 = vmax.f32 %v889_v41, 0.0  ;;  %3710 = vmatprep.mubr.msk.f32.mxu0 %vm367_vm0, %v342_v40  ;;  %v904_v47 = vadd.f32 %v3565_v42, %v4220_v43 }
  0xf6   : > { %v898_v48 = vpop.f32.mrf.mxu0 }
  0xf7   : > { %v899_v50 = vadd.f32 %v4220_v43, %v898_v48  ;;  %3760 = vmatprep.mubr.msk.f32.mxu1 %vm367_vm0, %v1471_v44  ;;  %v1474_v54 = vmax.f32 %v904_v47, 0.0 }
  0xf8   : > { %v3568_v51 = vpop.f32.mrf.mxu0  ;;  %3711 = vmatmul.mubr.msk.f32.gmra.mxu0 %vm367_vm0, %v343_v45  ;;  %3761 = vmatmul.mubr.msk.f32.gmra.mxu1 %vm367_vm0, %v1472_v46 }
  0xf9   : > { %v1473_v52 = vmax.f32 %v899_v50, 0.0  ;;  %3713 = vmatprep.mubr.msk.f32.mxu0 %vm367_vm0, %v344_v49  ;;  %v914_v55 = vadd.f32 %v3568_v51, %v4220_v43 }
  0xfa   : > { %v908_v56 = vpop.f32.mrf.mxu0 }
  0xfb   : > { %v909_v58 = vadd.f32 %v4220_v43, %v908_v56  ;;  %3763 = vmatprep.mubr.msk.f32.mxu1 %vm367_vm0, %v1473_v52  ;;  %v1476_v62 = vmax.f32 %v914_v55, 0.0 }
  0xfc   : > { %v3571_v59 = vpop.f32.mrf.mxu0  ;;  %3714 = vmatmul.mubr.msk.f32.gmra.mxu0 %vm367_vm0, %v345_v53  ;;  %3764 = vmatmul.mubr.msk.f32.gmra.mxu1 %vm367_vm0, %v1474_v54 }
  0xfd   : > { %v1475_v60 = vmax.f32 %v909_v58, 0.0  ;;  %3716 = vmatprep.mubr.msk.f32.mxu0 %vm367_vm0, %v346_v57  ;;  %v924_v63 = vadd.f32 %v3571_v59, %v4220_v43 }
  0xfe   : > { %v918_v0 = vpop.f32.mrf.mxu0 }
  0xff   : > { %v919_v2 = vadd.f32 %v4220_v43, %v918_v0  ;;  %3766 = vmatprep.mubr.msk.f32.mxu1 %vm367_vm0, %v1475_v60  ;;  %v1478_v6 = vmax.f32 %v924_v63, 0.0 }
 0x100   : > { %v3574_v3 = vpop.f32.mrf.mxu0  ;;  %3717 = vmatmul.mubr.msk.f32.gmra.mxu0 %vm367_vm0, %v347_v61  ;;  %3767 = vmatmul.mubr.msk.f32.gmra.mxu1 %vm367_vm0, %v1476_v62 }
 0x101   : > { %v1477_v4 = vmax.f32 %v919_v2, 0.0  ;;  %3719 = vmatprep.mubr.msk.f32.mxu0 %vm367_vm0, %v348_v1  ;;  %v934_v7 = vadd.f32 %v3574_v3, %v4220_v43 }
 0x102   : > { %v928_v8 = vpop.f32.mrf.mxu0 }
 0x103   : > { %v929_v10 = vadd.f32 %v4220_v43, %v928_v8  ;;  %3769 = vmatprep.mubr.msk.f32.mxu1 %vm367_vm0, %v1477_v4  ;;  %v1480_v14 = vmax.f32 %v934_v7, 0.0 }
 0x104   : > { %v3577_v11 = vpop.f32.mrf.mxu0  ;;  %3720 = vmatmul.mubr.msk.f32.gmra.mxu0 %vm367_vm0, %v349_v5  ;;  %3770 = vmatmul.mubr.msk.f32.gmra.mxu1 %vm367_vm0, %v1478_v6 }
 0x105   : > { %v1479_v12 = vmax.f32 %v929_v10, 0.0  ;;  %3722 = vmatprep.mubr.msk.f32.mxu0 %vm367_vm0, %v350_v9  ;;  %v944_v15 = vadd.f32 %v3577_v11, %v4220_v43 }
 0x106   : > { %v938_v16 = vpop.f32.mrf.mxu0 }
 0x107   : > { %v939_v18 = vadd.f32 %v4220_v43, %v938_v16  ;;  %3772 = vmatprep.mubr.msk.f32.mxu1 %vm367_vm0, %v1479_v12  ;;  %v1482_v22 = vmax.f32 %v944_v15, 0.0 }
 0x108   : > { %v3580_v19 = vpop.f32.mrf.mxu0  ;;  %3723 = vmatmul.mubr.msk.f32.gmra.mxu0 %vm367_vm0, %v351_v13  ;;  %3773 = vmatmul.mubr.msk.f32.gmra.mxu1 %vm367_vm0, %v1480_v14 }
 0x109   : > { %v1481_v20 = vmax.f32 %v939_v18, 0.0  ;;  %3725 = vmatprep.mubr.msk.f32.mxu0 %vm367_vm0, %v352_v17  ;;  %v954_v23 = vadd.f32 %v3580_v19, %v4220_v43 }
 0x10a   : > { %v948_v24 = vpop.f32.mrf.mxu0 }
 0x10b   : > { %v949_v26 = vadd.f32 %v4220_v43, %v948_v24  ;;  %3775 = vmatprep.mubr.msk.f32.mxu1 %vm367_vm0, %v1481_v20  ;;  %v1484_v30 = vmax.f32 %v954_v23, 0.0 }
 0x10c   : > { %v3583_v27 = vpop.f32.mrf.mxu0  ;;  %3726 = vmatmul.mubr.msk.f32.gmra.mxu0 %vm367_vm0, %v353_v21  ;;  %3776 = vmatmul.mubr.msk.f32.gmra.mxu1 %vm367_vm0, %v1482_v22 }
 0x10d   : > { %v1483_v28 = vmax.f32 %v949_v26, 0.0  ;;  %3728 = vmatprep.mubr.msk.f32.mxu0 %vm367_vm0, %v354_v25  ;;  %v964_v31 = vadd.f32 %v3583_v27, %v4220_v43 }
 0x10e   : > { %v958_v32 = vpop.f32.mrf.mxu0 }
 0x10f   : > { %v959_v33 = vadd.f32 %v4220_v43, %v958_v32  ;;  %3778 = vmatprep.mubr.msk.f32.mxu1 %vm367_vm0, %v1483_v28  ;;  %v1486_v36 = vmax.f32 %v964_v31, 0.0 }
 0x110   : > { %v3586_v34 = vpop.f32.mrf.mxu0  ;;  %3729 = vmatmul.mubr.msk.f32.gmra.mxu0 %vm367_vm0, %v355_v29  ;;  %3779 = vmatmul.mubr.msk.f32.gmra.mxu1 %vm367_vm0, %v1484_v30 }
 0x111   : > { %v1485_v35 = vmax.f32 %v959_v33, 0.0  ;;  %v974_v37 = vadd.f32 %v3586_v34, %v4220_v43 }
 0x112   : > { %v968_v38 = vpop.f32.mrf.mxu0 }
 0x113   : > { %v969_v39 = vadd.f32 %v4220_v43, %v968_v38  ;;  %3781 = vmatprep.mubr.msk.f32.mxu1 %vm367_vm0, %v1485_v35  ;;  %v1488_v42 = vmax.f32 %v974_v37, 0.0 }
 0x114   : > { %v3589_v40 = vpop.f32.mrf.mxu0  ;;  %3782 = vmatmul.mubr.msk.f32.gmra.mxu1 %vm367_vm0, %v1486_v36 }
 0x115   : > { %v1487_v41 = vmax.f32 %v969_v39, 0.0  ;;  %v984_v44 = vadd.f32 %v3589_v40, %v4220_v43 }
 0x116   : > { %v978_v45 = vpop.f32.mrf.mxu0 }
 0x117   : > { %v979_v46 = vadd.f32 %v4220_v43, %v978_v45  ;;  %3784 = vmatprep.mubr.msk.f32.mxu1 %vm367_vm0, %v1487_v41  ;;  %v1490_v49 = vmax.f32 %v984_v44, 0.0 }
 0x118   : > { %v3592_v47 = vpop.f32.mrf.mxu0  ;;  %3785 = vmatmul.mubr.msk.f32.gmra.mxu1 %vm367_vm0, %v1488_v42 }
 0x119   : > { %v1489_v48 = vmax.f32 %v979_v46, 0.0  ;;  %v994_v50 = vadd.f32 %v3592_v47, %v4220_v43 }
 0x11a   : > { %v988_v51 = vpop.f32.mrf.mxu0 }
 0x11b   : > { %v989_v52 = vadd.f32 %v4220_v43, %v988_v51  ;;  %3787 = vmatprep.mubr.msk.f32.mxu1 %vm367_vm0, %v1489_v48  ;;  %v1492_v55 = vmax.f32 %v994_v50, 0.0 }
 0x11c   : > { %v3595_v53 = vpop.f32.mrf.mxu0  ;;  %3788 = vmatmul.mubr.msk.f32.gmra.mxu1 %vm367_vm0, %v1490_v49 }
 0x11d   : > { %v1491_v54 = vmax.f32 %v989_v52, 0.0  ;;  %v1004_v56 = vadd.f32 %v3595_v53, %v4220_v43 }
 0x11e   : > { %v998_v57 = vpop.f32.mrf.mxu0 }
 0x11f   : > { %v999_v58 = vadd.f32 %v4220_v43, %v998_v57  ;;  %3790 = vmatprep.mubr.msk.f32.mxu1 %vm367_vm0, %v1491_v54  ;;  %v1494_v61 = vmax.f32 %v1004_v56, 0.0 }
 0x120   : > { %v3598_v59 = vpop.f32.mrf.mxu0  ;;  %3791 = vmatmul.mubr.msk.f32.gmra.mxu1 %vm367_vm0, %v1492_v55 }
 0x121   : > { %v1493_v60 = vmax.f32 %v999_v58, 0.0  ;;  %v1014_v62 = vadd.f32 %v3598_v59, %v4220_v43 }
 0x122   : > { %v1008_v63 = vpop.f32.mrf.mxu0 }
 0x123   : > { %v1009_v0 = vadd.f32 %v4220_v43, %v1008_v63  ;;  %3793 = vmatprep.mubr.msk.f32.mxu1 %vm367_vm0, %v1493_v60  ;;  %v1496_v3 = vmax.f32 %v1014_v62, 0.0 }
 0x124   : > { %v3601_v1 = vpop.f32.mrf.mxu0  ;;  %3794 = vmatmul.mubr.msk.f32.gmra.mxu1 %vm367_vm0, %v1494_v61 }
 0x125   : > { %v1495_v2 = vmax.f32 %v1009_v0, 0.0  ;;  %v1024_v4 = vadd.f32 %v3601_v1, %v4220_v43 }
 0x126   : > { %v1018_v5 = vpop.f32.mrf.mxu0 }
 0x127   : > { %v1019_v6 = vadd.f32 %v4220_v43, %v1018_v5  ;;  %3796 = vmatprep.mubr.msk.f32.mxu1 %vm367_vm0, %v1495_v2  ;;  %v1498_v9 = vmax.f32 %v1024_v4, 0.0 }
 0x128   : > { %v3604_v7 = vpop.f32.mrf.mxu0  ;;  %3797 = vmatmul.mubr.msk.f32.gmra.mxu1 %vm367_vm0, %v1496_v3 }
 0x129   : > { %v1497_v8 = vmax.f32 %v1019_v6, 0.0  ;;  %v1034_v10 = vadd.f32 %v3604_v7, %v4220_v43 }
 0x12a   : > { %v1028_v11 = vpop.f32.mrf.mxu0 }
 0x12b   : > { %v1029_v12 = vadd.f32 %v4220_v43, %v1028_v11  ;;  %3799 = vmatprep.mubr.msk.f32.mxu1 %vm367_vm0, %v1497_v8  ;;  %v1500_v15 = vmax.f32 %v1034_v10, 0.0 }
 0x12c   : > { %v3607_v13 = vpop.f32.mrf.mxu0  ;;  %3800 = vmatmul.mubr.msk.f32.gmra.mxu1 %vm367_vm0, %v1498_v9 }
 0x12d   : > { %v1499_v14 = vmax.f32 %v1029_v12, 0.0  ;;  %v1044_v16 = vadd.f32 %v3607_v13, %v4220_v43 }
 0x12e   : > { %v1038_v17 = vpop.f32.mrf.mxu0 }
 0x12f   : > { %v1039_v18 = vadd.f32 %v4220_v43, %v1038_v17  ;;  %3802 = vmatprep.mubr.msk.f32.mxu1 %vm367_vm0, %v1499_v14  ;;  %v1502_v21 = vmax.f32 %v1044_v16, 0.0 }
 0x130   : > { %v3610_v19 = vpop.f32.mrf.mxu0  ;;  %3803 = vmatmul.mubr.msk.f32.gmra.mxu1 %vm367_vm0, %v1500_v15 }
 0x131   : > { %v1501_v20 = vmax.f32 %v1039_v18, 0.0  ;;  %v1054_v22 = vadd.f32 %v3610_v19, %v4220_v43 }
 0x132   : > { %v1048_v23 = vpop.f32.mrf.mxu0 }
 0x133   : > { %v1049_v24 = vadd.f32 %v4220_v43, %v1048_v23  ;;  %3805 = vmatprep.mubr.msk.f32.mxu1 %vm367_vm0, %v1501_v20  ;;  %v1504_v27 = vmax.f32 %v1054_v22, 0.0 }
 0x134   : > { %v3613_v25 = vpop.f32.mrf.mxu0  ;;  %3806 = vmatmul.mubr.msk.f32.gmra.mxu1 %vm367_vm0, %v1502_v21 }
 0x135   : > { %v1503_v26 = vmax.f32 %v1049_v24, 0.0  ;;  %v1064_v28 = vadd.f32 %v3613_v25, %v4220_v43 }
 0x136   : > { %v1058_v29 = vpop.f32.mrf.mxu0 }
 0x137   : > { %v1059_v30 = vadd.f32 %v4220_v43, %v1058_v29  ;;  %3808 = vmatprep.mubr.msk.f32.mxu1 %vm367_vm0, %v1503_v26  ;;  %v1506_v33 = vmax.f32 %v1064_v28, 0.0 }
 0x138   : > { %v3616_v31 = vpop.f32.mrf.mxu0  ;;  %3809 = vmatmul.mubr.msk.f32.gmra.mxu1 %vm367_vm0, %v1504_v27 }
 0x139   : > { %v1505_v32 = vmax.f32 %v1059_v30, 0.0  ;;  %v1074_v34 = vadd.f32 %v3616_v31, %v4220_v43 }
 0x13a   : > { %v1068_v35 = vpop.f32.mrf.mxu0 }
 0x13b   : > { %v1069_v36 = vadd.f32 %v4220_v43, %v1068_v35  ;;  %3811 = vmatprep.mubr.msk.f32.mxu1 %vm367_vm0, %v1505_v32  ;;  %v1508_v39 = vmax.f32 %v1074_v34, 0.0 }
 0x13c   : > { %v3619_v37 = vpop.f32.mrf.mxu0  ;;  %3812 = vmatmul.mubr.msk.f32.gmra.mxu1 %vm367_vm0, %v1506_v33 }
 0x13d   : > { %v1507_v38 = vmax.f32 %v1069_v36, 0.0  ;;  %v1084_v40 = vadd.f32 %v3619_v37, %v4220_v43 }
 0x13e   : > { %v1078_v41 = vpop.f32.mrf.mxu0 }
 0x13f   : > { %v1079_v42 = vadd.f32 %v4220_v43, %v1078_v41  ;;  %3814 = vmatprep.mubr.msk.f32.mxu1 %vm367_vm0, %v1507_v38  ;;  %v1510_v46 = vmax.f32 %v1084_v40, 0.0 }
 0x140   : > { %v3622_v44 = vpop.f32.mrf.mxu0  ;;  %3815 = vmatmul.mubr.msk.f32.gmra.mxu1 %vm367_vm0, %v1508_v39 }
 0x141   : > { %v1509_v45 = vmax.f32 %v1079_v42, 0.0  ;;  %v1094_v47 = vadd.f32 %v3622_v44, %v4220_v43 }
 0x142   : > { %v1088_v48 = vpop.f32.mrf.mxu0 }
 0x143   : > { %v1089_v49 = vadd.f32 %v4220_v43, %v1088_v48  ;;  %3817 = vmatprep.mubr.msk.f32.mxu1 %vm367_vm0, %v1509_v45  ;;  %v1512_v52 = vmax.f32 %v1094_v47, 0.0 }
 0x144   : > { %v3625_v50 = vpop.f32.mrf.mxu0  ;;  %3818 = vmatmul.mubr.msk.f32.gmra.mxu1 %vm367_vm0, %v1510_v46 }
 0x145   : > { %v1511_v51 = vmax.f32 %v1089_v49, 0.0  ;;  %v1104_v53 = vadd.f32 %v3625_v50, %v4220_v43 }
 0x146   : > { %v1098_v54 = vpop.f32.mrf.mxu0 }
 0x147   : > { %v1099_v55 = vadd.f32 %v4220_v43, %v1098_v54  ;;  %3820 = vmatprep.mubr.msk.f32.mxu1 %vm367_vm0, %v1511_v51  ;;  %v1514_v58 = vmax.f32 %v1104_v53, 0.0 }
 0x148   : > { %v3628_v56 = vpop.f32.mrf.mxu0  ;;  %3821 = vmatmul.mubr.msk.f32.gmra.mxu1 %vm367_vm0, %v1512_v52 }
 0x149   : > { %v1513_v57 = vmax.f32 %v1099_v55, 0.0  ;;  %v1114_v59 = vadd.f32 %v3628_v56, %v4220_v43 }
 0x14a   : > { %v1108_v60 = vpop.f32.mrf.mxu0 }
 0x14b   : > { %v1109_v61 = vadd.f32 %v4220_v43, %v1108_v60  ;;  %3823 = vmatprep.mubr.msk.f32.mxu1 %vm367_vm0, %v1513_v57  ;;  %v1516_v0 = vmax.f32 %v1114_v59, 0.0 }
 0x14c   : > { %v3631_v62 = vpop.f32.mrf.mxu0  ;;  %3824 = vmatmul.mubr.msk.f32.gmra.mxu1 %vm367_vm0, %v1514_v58 }
 0x14d   : > { %v1515_v63 = vmax.f32 %v1109_v61, 0.0  ;;  %v1124_v1 = vadd.f32 %v3631_v62, %v4220_v43 }
 0x14e   : > { %v1118_v2 = vpop.f32.mrf.mxu0 }
 0x14f   : > { %v1119_v3 = vadd.f32 %v4220_v43, %v1118_v2  ;;  %3826 = vmatprep.mubr.msk.f32.mxu1 %vm367_vm0, %v1515_v63  ;;  %v1518_v6 = vmax.f32 %v1124_v1, 0.0 }
 0x150   : > { %v3634_v4 = vpop.f32.mrf.mxu0  ;;  %3827 = vmatmul.mubr.msk.f32.gmra.mxu1 %vm367_vm0, %v1516_v0 }
 0x151   : > { %v1517_v5 = vmax.f32 %v1119_v3, 0.0  ;;  %v1134_v7 = vadd.f32 %v3634_v4, %v4220_v43 }
 0x152   : > { %v1128_v8 = vpop.f32.mrf.mxu0 }
 0x153   : > { %v1129_v9 = vadd.f32 %v4220_v43, %v1128_v8  ;;  %3829 = vmatprep.mubr.msk.f32.mxu1 %vm367_vm0, %v1517_v5  ;;  %v1520_v12 = vmax.f32 %v1134_v7, 0.0 }
 0x154   : > { %v3637_v10 = vpop.f32.mrf.mxu0  ;;  %3830 = vmatmul.mubr.msk.f32.gmra.mxu1 %vm367_vm0, %v1518_v6 }
 0x155   : > { %v1519_v11 = vmax.f32 %v1129_v9, 0.0  ;;  %v1144_v13 = vadd.f32 %v3637_v10, %v4220_v43 }
 0x156   : > { %v1138_v14 = vpop.f32.mrf.mxu0 }
 0x157   : > { %v1139_v15 = vadd.f32 %v4220_v43, %v1138_v14  ;;  %3832 = vmatprep.mubr.msk.f32.mxu1 %vm367_vm0, %v1519_v11  ;;  %v1522_v18 = vmax.f32 %v1144_v13, 0.0 }
 0x158   : > { %v3640_v16 = vpop.f32.mrf.mxu0  ;;  %3833 = vmatmul.mubr.msk.f32.gmra.mxu1 %vm367_vm0, %v1520_v12 }
 0x159   : > { %v1521_v17 = vmax.f32 %v1139_v15, 0.0  ;;  %v1154_v19 = vadd.f32 %v3640_v16, %v4220_v43 }
 0x15a   : > { %v1148_v20 = vpop.f32.mrf.mxu0 }
 0x15b   : > { %v1149_v21 = vadd.f32 %v4220_v43, %v1148_v20  ;;  %3835 = vmatprep.mubr.msk.f32.mxu1 %vm367_vm0, %v1521_v17  ;;  %v1524_v24 = vmax.f32 %v1154_v19, 0.0 }
 0x15c   : > { %v3643_v22 = vpop.f32.mrf.mxu0  ;;  %3836 = vmatmul.mubr.msk.f32.gmra.mxu1 %vm367_vm0, %v1522_v18 }
 0x15d   : > { %v1523_v23 = vmax.f32 %v1149_v21, 0.0  ;;  %v1164_v25 = vadd.f32 %v3643_v22, %v4220_v43 }
 0x15e   : > { %v1158_v26 = vpop.f32.mrf.mxu0 }
 0x15f   : > { %v1159_v27 = vadd.f32 %v4220_v43, %v1158_v26  ;;  %3838 = vmatprep.mubr.msk.f32.mxu1 %vm367_vm0, %v1523_v23  ;;  %v1526_v30 = vmax.f32 %v1164_v25, 0.0 }
 0x160   : > { %v3646_v28 = vpop.f32.mrf.mxu0  ;;  %3839 = vmatmul.mubr.msk.f32.gmra.mxu1 %vm367_vm0, %v1524_v24 }
 0x161   : > { %v1525_v29 = vmax.f32 %v1159_v27, 0.0  ;;  %v1174_v31 = vadd.f32 %v3646_v28, %v4220_v43 }
 0x162   : > { %v1168_v32 = vpop.f32.mrf.mxu0 }
 0x163   : > { %v1169_v33 = vadd.f32 %v4220_v43, %v1168_v32  ;;  %3841 = vmatprep.mubr.msk.f32.mxu1 %vm367_vm0, %v1525_v29  ;;  %v1528_v36 = vmax.f32 %v1174_v31, 0.0 }
 0x164   : > { %v3649_v34 = vpop.f32.mrf.mxu0  ;;  %3842 = vmatmul.mubr.msk.f32.gmra.mxu1 %vm367_vm0, %v1526_v30 }
 0x165   : > { %v1527_v35 = vmax.f32 %v1169_v33, 0.0  ;;  %v1184_v37 = vadd.f32 %v3649_v34, %v4220_v43 }
 0x166   : > { %v1178_v38 = vpop.f32.mrf.mxu0 }
 0x167   : > { %v1179_v39 = vadd.f32 %v4220_v43, %v1178_v38  ;;  %3844 = vmatprep.mubr.msk.f32.mxu1 %vm367_vm0, %v1527_v35  ;;  %v1530_v42 = vmax.f32 %v1184_v37, 0.0 }
 0x168   : > { %v3652_v40 = vpop.f32.mrf.mxu0  ;;  %3845 = vmatmul.mubr.msk.f32.gmra.mxu1 %vm367_vm0, %v1528_v36 }
 0x169   : > { %v1529_v41 = vmax.f32 %v1179_v39, 0.0  ;;  %v1194_v44 = vadd.f32 %v3652_v40, %v4220_v43 }
 0x16a   : > { %v1188_v45 = vpop.f32.mrf.mxu0 }
 0x16b   : > { %v1189_v46 = vadd.f32 %v4220_v43, %v1188_v45  ;;  %3847 = vmatprep.mubr.msk.f32.mxu1 %vm367_vm0, %v1529_v41  ;;  %v1532_v49 = vmax.f32 %v1194_v44, 0.0 }
 0x16c   : > { %v3655_v47 = vpop.f32.mrf.mxu0  ;;  %3848 = vmatmul.mubr.msk.f32.gmra.mxu1 %vm367_vm0, %v1530_v42 }
 0x16d   : > { %v1531_v48 = vmax.f32 %v1189_v46, 0.0  ;;  %v1204_v50 = vadd.f32 %v3655_v47, %v4220_v43 }
 0x16e   : > { %v1198_v51 = vpop.f32.mrf.mxu0 }
 0x16f   : > { %v1199_v52 = vadd.f32 %v4220_v43, %v1198_v51  ;;  %3850 = vmatprep.mubr.msk.f32.mxu1 %vm367_vm0, %v1531_v48  ;;  %v1534_v55 = vmax.f32 %v1204_v50, 0.0 }
 0x170   : > { %v3658_v53 = vpop.f32.mrf.mxu0  ;;  %3851 = vmatmul.mubr.msk.f32.gmra.mxu1 %vm367_vm0, %v1532_v49 }
 0x171   : > { %v1533_v54 = vmax.f32 %v1199_v52, 0.0  ;;  %v1214_v56 = vadd.f32 %v3658_v53, %v4220_v43 }
 0x172   : > { %v1208_v57 = vpop.f32.mrf.mxu0 }
 0x173   : > { %v1209_v58 = vadd.f32 %v4220_v43, %v1208_v57  ;;  %3853 = vmatprep.mubr.msk.f32.mxu1 %vm367_vm0, %v1533_v54  ;;  %v1536_v61 = vmax.f32 %v1214_v56, 0.0 }
 0x174   : > { %v3661_v59 = vpop.f32.mrf.mxu0  ;;  %3854 = vmatmul.mubr.msk.f32.gmra.mxu1 %vm367_vm0, %v1534_v55  ;;  %v4480_v55 = vld [vmem:[%s4951_s4] ss:$0 sm:$0xff] }
 0x175   : > { %v1535_v60 = vmax.f32 %v1209_v58, 0.0  ;;  %v1224_v62 = vadd.f32 %v3661_v59, %v4220_v43 }
 0x176   : > { %v1218_v63 = vpop.f32.mrf.mxu0 }
 0x177   : > { %v1219_v0 = vadd.f32 %v4220_v43, %v1218_v63  ;;  %3856 = vmatprep.mubr.msk.f32.mxu1 %vm367_vm0, %v1535_v60  ;;  %v1538_v3 = vmax.f32 %v1224_v62, 0.0 }
 0x178   : > { %v3664_v1 = vpop.f32.mrf.mxu0  ;;  %3857 = vmatmul.mubr.msk.f32.gmra.mxu1 %vm367_vm0, %v1536_v61 }
 0x179   : > { %v1537_v2 = vmax.f32 %v1219_v0, 0.0  ;;  %v1234_v4 = vadd.f32 %v3664_v1, %v4220_v43 }
 0x17a   : > { %v1228_v5 = vpop.f32.mrf.mxu0 }
 0x17b   : > { %v1229_v6 = vadd.f32 %v4220_v43, %v1228_v5  ;;  %3859 = vmatprep.mubr.msk.f32.mxu1 %vm367_vm0, %v1537_v2  ;;  %v1540_v9 = vmax.f32 %v1234_v4, 0.0 }
 0x17c   : > { %v3667_v7 = vpop.f32.mrf.mxu0  ;;  %3860 = vmatmul.mubr.msk.f32.gmra.mxu1 %vm367_vm0, %v1538_v3 }
 0x17d   : > { %v1539_v8 = vmax.f32 %v1229_v6, 0.0  ;;  %v1244_v10 = vadd.f32 %v3667_v7, %v4220_v43 }
 0x17e   : > { %v1238_v11 = vpop.f32.mrf.mxu0 }
 0x17f   : > { %v1239_v12 = vadd.f32 %v4220_v43, %v1238_v11  ;;  %3862 = vmatprep.mubr.msk.f32.mxu1 %vm367_vm0, %v1539_v8  ;;  %v1542_v15 = vmax.f32 %v1244_v10, 0.0 }
 0x180   : > { %v3670_v13 = vpop.f32.mrf.mxu0  ;;  %3863 = vmatmul.mubr.msk.f32.gmra.mxu1 %vm367_vm0, %v1540_v9 }
 0x181   : > { %v1541_v14 = vmax.f32 %v1239_v12, 0.0  ;;  %v1254_v16 = vadd.f32 %v3670_v13, %v4220_v43 }
 0x182   : > { %v1248_v17 = vpop.f32.mrf.mxu0 }
 0x183   : > { %v1249_v18 = vadd.f32 %v4220_v43, %v1248_v17  ;;  %3865 = vmatprep.mubr.msk.f32.mxu1 %vm367_vm0, %v1541_v14  ;;  %v1544_v21 = vmax.f32 %v1254_v16, 0.0 }
 0x184   : > { %v3673_v19 = vpop.f32.mrf.mxu0  ;;  %3866 = vmatmul.mubr.msk.f32.gmra.mxu1 %vm367_vm0, %v1542_v15 }
 0x185   : > { %v1543_v20 = vmax.f32 %v1249_v18, 0.0  ;;  %v1264_v22 = vadd.f32 %v3673_v19, %v4220_v43 }
 0x186   : > { %v1258_v23 = vpop.f32.mrf.mxu0 }
 0x187   : > { %v1259_v24 = vadd.f32 %v4220_v43, %v1258_v23  ;;  %3868 = vmatprep.mubr.msk.f32.mxu1 %vm367_vm0, %v1543_v20  ;;  %v1546_v27 = vmax.f32 %v1264_v22, 0.0 }
 0x188   : > { %v3676_v25 = vpop.f32.mrf.mxu0  ;;  %3869 = vmatmul.mubr.msk.f32.gmra.mxu1 %vm367_vm0, %v1544_v21 }
 0x189   : > { %v1545_v26 = vmax.f32 %v1259_v24, 0.0  ;;  %v1274_v28 = vadd.f32 %v3676_v25, %v4220_v43 }
 0x18a   : > { %v1268_v29 = vpop.f32.mrf.mxu0 }
 0x18b   : > { %v1269_v30 = vadd.f32 %v4220_v43, %v1268_v29  ;;  %3871 = vmatprep.mubr.msk.f32.mxu1 %vm367_vm0, %v1545_v26  ;;  %v1548_v33 = vmax.f32 %v1274_v28, 0.0 }
 0x18c   : > { %v3679_v31 = vpop.f32.mrf.mxu0  ;;  %3872 = vmatmul.mubr.msk.f32.gmra.mxu1 %vm367_vm0, %v1546_v27 }
 0x18d   : > { %v1547_v32 = vmax.f32 %v1269_v30, 0.0  ;;  %v1284_v34 = vadd.f32 %v3679_v31, %v4220_v43 }
 0x18e   : > { %v1278_v35 = vpop.f32.mrf.mxu0 }
 0x18f   : > { %v1279_v36 = vadd.f32 %v4220_v43, %v1278_v35  ;;  %3874 = vmatprep.mubr.msk.f32.mxu1 %vm367_vm0, %v1547_v32  ;;  %v1550_v39 = vmax.f32 %v1284_v34, 0.0 }
 0x190   : > { %v3682_v37 = vpop.f32.mrf.mxu0  ;;  %3875 = vmatmul.mubr.msk.f32.gmra.mxu1 %vm367_vm0, %v1548_v33 }
 0x191   : > { %v1549_v38 = vmax.f32 %v1279_v36, 0.0  ;;  %v1294_v40 = vadd.f32 %v3682_v37, %v4220_v43 }
 0x192   : > { %v1288_v41 = vpop.f32.mrf.mxu0 }
 0x193   : > { %v1289_v42 = vadd.f32 %v4220_v43, %v1288_v41  ;;  %3877 = vmatprep.mubr.msk.f32.mxu1 %vm367_vm0, %v1549_v38  ;;  %v1552_v46 = vmax.f32 %v1294_v40, 0.0 }
 0x194   : > { %v3685_v44 = vpop.f32.mrf.mxu0  ;;  %3878 = vmatmul.mubr.msk.f32.gmra.mxu1 %vm367_vm0, %v1550_v39 }
 0x195   : > { %v1551_v45 = vmax.f32 %v1289_v42, 0.0  ;;  %v1304_v47 = vadd.f32 %v3685_v44, %v4220_v43 }
 0x196   : > { %v1298_v48 = vpop.f32.mrf.mxu0 }
 0x197   : > { %v1299_v49 = vadd.f32 %v4220_v43, %v1298_v48  ;;  %3880 = vmatprep.mubr.msk.f32.mxu1 %vm367_vm0, %v1551_v45  ;;  %v1554_v52 = vmax.f32 %v1304_v47, 0.0 }
 0x198   : > { %v3688_v50 = vpop.f32.mrf.mxu0  ;;  %3881 = vmatmul.mubr.msk.f32.gmra.mxu1 %vm367_vm0, %v1552_v46 }
 0x199   : > { %v1553_v51 = vmax.f32 %v1299_v49, 0.0  ;;  %v1314_v53 = vadd.f32 %v3688_v50, %v4220_v43 }
 0x19a   : > { %v1308_v54 = vpop.f32.mrf.mxu0 }
 0x19b   : > { %v1309_v56 = vadd.f32 %v4220_v43, %v1308_v54  ;;  %3883 = vmatprep.mubr.msk.f32.mxu1 %vm367_vm0, %v1553_v51  ;;  %v1556_v61 = vmax.f32 %v1314_v53, 0.0 }
 0x19c   : > { %v3691_v57 = vpop.f32.mrf.mxu0  ;;  %v3741_v58 = vpop.f32.mrf.mxu1  ;;  %3884 = vmatmul.mubr.msk.f32.gmra.mxu1 %vm367_vm0, %v1554_v52 }
 0x19d   : > { %v1555_v59 = vmax.f32 %v1309_v56, 0.0  ;;  %v2052_v60 = vadd.f32 %v3741_v58, %v4480_v55  ;;  %v1324_v62 = vadd.f32 %v3691_v57, %v4220_v43 }
 0x19e   : > { %v1318_v63 = vpop.f32.mrf.mxu0  ;;  %v2046_v0 = vpop.f32.mrf.mxu1 }
 0x19f   : > { %v2686_v1 = vmax.f32 %v2052_v60, 0.0  ;;  %v1319_v2 = vadd.f32 %v4220_v43, %v1318_v63  ;;  %v2047_v3 = vadd.f32 %v4480_v55, %v2046_v0  ;;  %3886 = vmatprep.mubr.msk.f32.mxu1 %vm367_vm0, %v1555_v59  ;;  %v1558_v9 = vmax.f32 %v1324_v62, 0.0 }
 0x1a0   : > { %v3694_v4 = vpop.f32.mrf.mxu0  ;;  %v3744_v5 = vpop.f32.mrf.mxu1  ;;  %3887 = vmatmul.mubr.msk.f32.gmra.mxu1 %vm367_vm0, %v1556_v61 }
 0x1a1   : > { %2815 = vst.msk [vmem:[%s4491_s23 + $0x8] sm:$0xff] %vm2813_vm1, %v2686_v1  ;;  %v1557_v6 = vmax.f32 %v1319_v2, 0.0  ;;  %v2685_v7 = vmax.f32 %v2047_v3, 0.0  ;;  %v2062_v8 = vadd.f32 %v3744_v5, %v4480_v55  ;;  %v1334_v10 = vadd.f32 %v3694_v4, %v4220_v43 }
 0x1a2   : > { %v1328_v11 = vpop.f32.mrf.mxu0  ;;  %v2056_v12 = vpop.f32.mrf.mxu1 }
 0x1a3   : > { %2814 = vst.msk [vmem:[%s4491_s23] sm:$0xff] %vm2813_vm1, %v2685_v7  ;;  %v2688_v13 = vmax.f32 %v2062_v8, 0.0  ;;  %v1329_v14 = vadd.f32 %v4220_v43, %v1328_v11  ;;  %v2057_v15 = vadd.f32 %v4480_v55, %v2056_v12  ;;  %3889 = vmatprep.mubr.msk.f32.mxu1 %vm367_vm0, %v1557_v6  ;;  %v1560_v21 = vmax.f32 %v1334_v10, 0.0 }
 0x1a4   : > { %v3697_v16 = vpop.f32.mrf.mxu0  ;;  %v3747_v17 = vpop.f32.mrf.mxu1  ;;  %3890 = vmatmul.mubr.msk.f32.gmra.mxu1 %vm367_vm0, %v1558_v9 }
 0x1a5   : > { %2817 = vst.msk [vmem:[%s4491_s23 + $0x18] sm:$0xff] %vm2813_vm1, %v2688_v13  ;;  %v1559_v18 = vmax.f32 %v1329_v14, 0.0  ;;  %v2687_v19 = vmax.f32 %v2057_v15, 0.0  ;;  %v2072_v20 = vadd.f32 %v3747_v17, %v4480_v55  ;;  %v1344_v22 = vadd.f32 %v3697_v16, %v4220_v43 }
 0x1a6   : > { %v1338_v23 = vpop.f32.mrf.mxu0  ;;  %v2066_v24 = vpop.f32.mrf.mxu1 }
 0x1a7   : > { %2816 = vst.msk [vmem:[%s4491_s23 + $0x10] sm:$0xff] %vm2813_vm1, %v2687_v19  ;;  %v2690_v25 = vmax.f32 %v2072_v20, 0.0  ;;  %v1339_v26 = vadd.f32 %v4220_v43, %v1338_v23  ;;  %v2067_v27 = vadd.f32 %v4480_v55, %v2066_v24  ;;  %3892 = vmatprep.mubr.msk.f32.mxu1 %vm367_vm0, %v1559_v18  ;;  %v1562_v33 = vmax.f32 %v1344_v22, 0.0  ;;  %v4524_v43 = vld [vmem:[%s4949_s2] ss:$0 sm:$0xff] }
 0x1a8   : > { %v3700_v28 = vpop.f32.mrf.mxu0  ;;  %v3750_v29 = vpop.f32.mrf.mxu1  ;;  %3893 = vmatmul.mubr.msk.f32.gmra.mxu1 %vm367_vm0, %v1560_v21 }
 0x1a9   : > { %2819 = vst.msk [vmem:[%s4491_s23 + $0x28] sm:$0xff] %vm2813_vm1, %v2690_v25  ;;  %v1561_v30 = vmax.f32 %v1339_v26, 0.0  ;;  %v2689_v31 = vmax.f32 %v2067_v27, 0.0  ;;  %v2082_v32 = vadd.f32 %v3750_v29, %v4480_v55  ;;  %v1354_v34 = vadd.f32 %v4524_v43, %v3700_v28 }
 0x1aa   : > { %v1348_v35 = vpop.f32.mrf.mxu0  ;;  %v2076_v36 = vpop.f32.mrf.mxu1 }
 0x1ab   : > { %2818 = vst.msk [vmem:[%s4491_s23 + $0x20] sm:$0xff] %vm2813_vm1, %v2689_v31  ;;  %v2692_v37 = vmax.f32 %v2082_v32, 0.0  ;;  %v1349_v38 = vadd.f32 %v4524_v43, %v1348_v35  ;;  %v2077_v39 = vadd.f32 %v4480_v55, %v2076_v36  ;;  %3895 = vmatprep.mubr.msk.f32.mxu1 %vm367_vm0, %v1561_v30  ;;  %v1564_v46 = vmax.f32 %v1354_v34, 0.0 }
 0x1ac   : > { %v3703_v40 = vpop.f32.mrf.mxu0  ;;  %v3753_v41 = vpop.f32.mrf.mxu1  ;;  %3896 = vmatmul.mubr.msk.f32.gmra.mxu1 %vm367_vm0, %v1562_v33 }
 0x1ad   : > { %2821 = vst.msk [vmem:[%s4491_s23 + $0x38] sm:$0xff] %vm2813_vm1, %v2692_v37  ;;  %v1563_v42 = vmax.f32 %v1349_v38, 0.0  ;;  %v2691_v44 = vmax.f32 %v2077_v39, 0.0  ;;  %v2092_v45 = vadd.f32 %v3753_v41, %v4480_v55  ;;  %v1364_v47 = vadd.f32 %v4524_v43, %v3703_v40 }
 0x1ae   : > { %v1358_v48 = vpop.f32.mrf.mxu0  ;;  %v2086_v49 = vpop.f32.mrf.mxu1 }
 0x1af   : > { %2820 = vst.msk [vmem:[%s4491_s23 + $0x30] sm:$0xff] %vm2813_vm1, %v2691_v44  ;;  %v2694_v50 = vmax.f32 %v2092_v45, 0.0  ;;  %v1359_v51 = vadd.f32 %v4524_v43, %v1358_v48  ;;  %v2087_v52 = vadd.f32 %v4480_v55, %v2086_v49  ;;  %3898 = vmatprep.mubr.msk.f32.mxu1 %vm367_vm0, %v1563_v42  ;;  %v1566_v59 = vmax.f32 %v1364_v47, 0.0 }
 0x1b0   : > { %v3706_v53 = vpop.f32.mrf.mxu0  ;;  %v3756_v54 = vpop.f32.mrf.mxu1  ;;  %3899 = vmatmul.mubr.msk.f32.gmra.mxu1 %vm367_vm0, %v1564_v46 }
 0x1b1   : > { %2823 = vst.msk [vmem:[%s4491_s23 + $0x48] sm:$0xff] %vm2813_vm1, %v2694_v50  ;;  %v1565_v56 = vmax.f32 %v1359_v51, 0.0  ;;  %v2693_v57 = vmax.f32 %v2087_v52, 0.0  ;;  %v2102_v58 = vadd.f32 %v3756_v54, %v4480_v55  ;;  %v1374_v60 = vadd.f32 %v4524_v43, %v3706_v53 }
 0x1b2   : > { %v1368_v61 = vpop.f32.mrf.mxu0  ;;  %v2096_v62 = vpop.f32.mrf.mxu1 }
 0x1b3   : > { %2822 = vst.msk [vmem:[%s4491_s23 + $0x40] sm:$0xff] %vm2813_vm1, %v2693_v57  ;;  %v2696_v63 = vmax.f32 %v2102_v58, 0.0  ;;  %v1369_v0 = vadd.f32 %v4524_v43, %v1368_v61  ;;  %v2097_v1 = vadd.f32 %v4480_v55, %v2096_v62  ;;  %3901 = vmatprep.mubr.msk.f32.mxu1 %vm367_vm0, %v1565_v56  ;;  %v1568_v7 = vmax.f32 %v1374_v60, 0.0 }
 0x1b4   : > { %v3709_v2 = vpop.f32.mrf.mxu0  ;;  %v3759_v3 = vpop.f32.mrf.mxu1  ;;  %3902 = vmatmul.mubr.msk.f32.gmra.mxu1 %vm367_vm0, %v1566_v59 }
 0x1b5   : > { %2825 = vst.msk [vmem:[%s4491_s23 + $0x58] sm:$0xff] %vm2813_vm1, %v2696_v63  ;;  %v1567_v4 = vmax.f32 %v1369_v0, 0.0  ;;  %v2695_v5 = vmax.f32 %v2097_v1, 0.0  ;;  %v2112_v6 = vadd.f32 %v3759_v3, %v4480_v55  ;;  %v1384_v8 = vadd.f32 %v4524_v43, %v3709_v2 }
 0x1b6   : > { %v1378_v9 = vpop.f32.mrf.mxu0  ;;  %v2106_v10 = vpop.f32.mrf.mxu1 }
 0x1b7   : > { %2824 = vst.msk [vmem:[%s4491_s23 + $0x50] sm:$0xff] %vm2813_vm1, %v2695_v5  ;;  %v2698_v11 = vmax.f32 %v2112_v6, 0.0  ;;  %v1379_v12 = vadd.f32 %v4524_v43, %v1378_v9  ;;  %v2107_v13 = vadd.f32 %v4480_v55, %v2106_v10  ;;  %3904 = vmatprep.mubr.msk.f32.mxu1 %vm367_vm0, %v1567_v4  ;;  %v1570_v19 = vmax.f32 %v1384_v8, 0.0 }
 0x1b8   : > { %v3712_v14 = vpop.f32.mrf.mxu0  ;;  %v3762_v15 = vpop.f32.mrf.mxu1  ;;  %3905 = vmatmul.mubr.msk.f32.gmra.mxu1 %vm367_vm0, %v1568_v7 }
 0x1b9   : > { %2827 = vst.msk [vmem:[%s4491_s23 + $0x68] sm:$0xff] %vm2813_vm1, %v2698_v11  ;;  %v1569_v16 = vmax.f32 %v1379_v12, 0.0  ;;  %v2697_v17 = vmax.f32 %v2107_v13, 0.0  ;;  %v2122_v18 = vadd.f32 %v3762_v15, %v4480_v55  ;;  %v1394_v20 = vadd.f32 %v4524_v43, %v3712_v14 }
 0x1ba   : > { %v1388_v21 = vpop.f32.mrf.mxu0  ;;  %v2116_v22 = vpop.f32.mrf.mxu1 }
 0x1bb   : > { %2826 = vst.msk [vmem:[%s4491_s23 + $0x60] sm:$0xff] %vm2813_vm1, %v2697_v17  ;;  %v2700_v23 = vmax.f32 %v2122_v18, 0.0  ;;  %v1389_v24 = vadd.f32 %v4524_v43, %v1388_v21  ;;  %v2117_v25 = vadd.f32 %v4480_v55, %v2116_v22  ;;  %3907 = vmatprep.mubr.msk.f32.mxu1 %vm367_vm0, %v1569_v16  ;;  %v1572_v31 = vmax.f32 %v1394_v20, 0.0 }
 0x1bc   : > { %v3715_v26 = vpop.f32.mrf.mxu0  ;;  %v3765_v27 = vpop.f32.mrf.mxu1  ;;  %3908 = vmatmul.mubr.msk.f32.gmra.mxu1 %vm367_vm0, %v1570_v19 }
 0x1bd   : > { %2829 = vst.msk [vmem:[%s4491_s23 + $0x78] sm:$0xff] %vm2813_vm1, %v2700_v23  ;;  %v1571_v28 = vmax.f32 %v1389_v24, 0.0  ;;  %v2699_v29 = vmax.f32 %v2117_v25, 0.0  ;;  %v2132_v30 = vadd.f32 %v3765_v27, %v4480_v55  ;;  %v1404_v32 = vadd.f32 %v4524_v43, %v3715_v26 }
 0x1be   : > { %v1398_v33 = vpop.f32.mrf.mxu0  ;;  %v2126_v34 = vpop.f32.mrf.mxu1 }
 0x1bf   : > { %2828 = vst.msk [vmem:[%s4491_s23 + $0x70] sm:$0xff] %vm2813_vm1, %v2699_v29  ;;  %v2702_v35 = vmax.f32 %v2132_v30, 0.0  ;;  %v1399_v36 = vadd.f32 %v4524_v43, %v1398_v33  ;;  %v2127_v37 = vadd.f32 %v4480_v55, %v2126_v34  ;;  %3910 = vmatprep.mubr.msk.f32.mxu1 %vm367_vm0, %v1571_v28  ;;  %v1574_v44 = vmax.f32 %v1404_v32, 0.0 }
 0x1c0   : > { %v3718_v38 = vpop.f32.mrf.mxu0  ;;  %v3768_v39 = vpop.f32.mrf.mxu1  ;;  %3911 = vmatmul.mubr.msk.f32.gmra.mxu1 %vm367_vm0, %v1572_v31 }
 0x1c1   : > { %2831 = vst.msk [vmem:[%s4491_s23 + $0x88] sm:$0xff] %vm2813_vm1, %v2702_v35  ;;  %v1573_v40 = vmax.f32 %v1399_v36, 0.0  ;;  %v2701_v41 = vmax.f32 %v2127_v37, 0.0  ;;  %v2142_v42 = vadd.f32 %v3768_v39, %v4480_v55  ;;  %v1414_v45 = vadd.f32 %v4524_v43, %v3718_v38 }
 0x1c2   : > { %v1408_v46 = vpop.f32.mrf.mxu0  ;;  %v2136_v47 = vpop.f32.mrf.mxu1 }
 0x1c3   : > { %2830 = vst.msk [vmem:[%s4491_s23 + $0x80] sm:$0xff] %vm2813_vm1, %v2701_v41  ;;  %v2704_v48 = vmax.f32 %v2142_v42, 0.0  ;;  %v1409_v49 = vadd.f32 %v4524_v43, %v1408_v46  ;;  %v2137_v50 = vadd.f32 %v4480_v55, %v2136_v47  ;;  %3913 = vmatprep.mubr.msk.f32.mxu1 %vm367_vm0, %v1573_v40  ;;  %v1576_v57 = vmax.f32 %v1414_v45, 0.0 }
 0x1c4   : > { %v3721_v51 = vpop.f32.mrf.mxu0  ;;  %v3771_v52 = vpop.f32.mrf.mxu1  ;;  %3914 = vmatmul.mubr.msk.f32.gmra.mxu1 %vm367_vm0, %v1574_v44 }
 0x1c5   : > { %2833 = vst.msk [vmem:[%s4491_s23 + $0x98] sm:$0xff] %vm2813_vm1, %v2704_v48  ;;  %v1575_v53 = vmax.f32 %v1409_v49, 0.0  ;;  %v2703_v54 = vmax.f32 %v2137_v50, 0.0  ;;  %v2152_v56 = vadd.f32 %v3771_v52, %v4480_v55  ;;  %v1424_v58 = vadd.f32 %v4524_v43, %v3721_v51 }
 0x1c6   : > { %v1418_v59 = vpop.f32.mrf.mxu0  ;;  %v2146_v60 = vpop.f32.mrf.mxu1 }
 0x1c7   : > { %2832 = vst.msk [vmem:[%s4491_s23 + $0x90] sm:$0xff] %vm2813_vm1, %v2703_v54  ;;  %v2706_v61 = vmax.f32 %v2152_v56, 0.0  ;;  %v1419_v62 = vadd.f32 %v4524_v43, %v1418_v59  ;;  %v2147_v63 = vadd.f32 %v4480_v55, %v2146_v60  ;;  %3916 = vmatprep.mubr.msk.f32.mxu1 %vm367_vm0, %v1575_v53  ;;  %v1578_v5 = vmax.f32 %v1424_v58, 0.0 }
 0x1c8   : > { %v3724_v0 = vpop.f32.mrf.mxu0  ;;  %v3774_v1 = vpop.f32.mrf.mxu1  ;;  %3917 = vmatmul.mubr.msk.f32.gmra.mxu1 %vm367_vm0, %v1576_v57 }
 0x1c9   : > { %2835 = vst.msk [vmem:[%s4491_s23 + $0xa8] sm:$0xff] %vm2813_vm1, %v2706_v61  ;;  %v1577_v2 = vmax.f32 %v1419_v62, 0.0  ;;  %v2705_v3 = vmax.f32 %v2147_v63, 0.0  ;;  %v2162_v4 = vadd.f32 %v3774_v1, %v4480_v55  ;;  %v1434_v6 = vadd.f32 %v4524_v43, %v3724_v0 }
 0x1ca   : > { %v1428_v7 = vpop.f32.mrf.mxu0  ;;  %v2156_v8 = vpop.f32.mrf.mxu1 }
 0x1cb   : > { %2834 = vst.msk [vmem:[%s4491_s23 + $0xa0] sm:$0xff] %vm2813_vm1, %v2705_v3  ;;  %v2708_v9 = vmax.f32 %v2162_v4, 0.0  ;;  %v1429_v10 = vadd.f32 %v4524_v43, %v1428_v7  ;;  %v2157_v11 = vadd.f32 %v4480_v55, %v2156_v8  ;;  %3919 = vmatprep.mubr.msk.f32.mxu1 %vm367_vm0, %v1577_v2  ;;  %v1580_v17 = vmax.f32 %v1434_v6, 0.0 }
 0x1cc   : > { %v3727_v12 = vpop.f32.mrf.mxu0  ;;  %v3777_v13 = vpop.f32.mrf.mxu1  ;;  %3920 = vmatmul.mubr.msk.f32.gmra.mxu1 %vm367_vm0, %v1578_v5 }
 0x1cd   : > { %2837 = vst.msk [vmem:[%s4491_s23 + $0xb8] sm:$0xff] %vm2813_vm1, %v2708_v9  ;;  %v1579_v14 = vmax.f32 %v1429_v10, 0.0  ;;  %v2707_v15 = vmax.f32 %v2157_v11, 0.0  ;;  %v2172_v16 = vadd.f32 %v3777_v13, %v4480_v55  ;;  %v1444_v18 = vadd.f32 %v4524_v43, %v3727_v12 }
 0x1ce   : > { %v1438_v19 = vpop.f32.mrf.mxu0  ;;  %v2166_v20 = vpop.f32.mrf.mxu1 }
 0x1cf   : > { %2836 = vst.msk [vmem:[%s4491_s23 + $0xb0] sm:$0xff] %vm2813_vm1, %v2707_v15  ;;  %v2710_v21 = vmax.f32 %v2172_v16, 0.0  ;;  %v1439_v22 = vadd.f32 %v4524_v43, %v1438_v19  ;;  %v2167_v23 = vadd.f32 %v4480_v55, %v2166_v20  ;;  %3922 = vmatprep.mubr.msk.f32.mxu1 %vm367_vm0, %v1579_v14  ;;  %v1582_v29 = vmax.f32 %v1444_v18, 0.0 }
 0x1d0   : > { %v3730_v24 = vpop.f32.mrf.mxu0  ;;  %v3780_v25 = vpop.f32.mrf.mxu1  ;;  %3923 = vmatmul.mubr.msk.f32.gmra.mxu1 %vm367_vm0, %v1580_v17 }
 0x1d1   : > { %2839 = vst.msk [vmem:[%s4491_s23 + $0xc8] sm:$0xff] %vm2813_vm1, %v2710_v21  ;;  %v1581_v26 = vmax.f32 %v1439_v22, 0.0  ;;  %v2709_v27 = vmax.f32 %v2167_v23, 0.0  ;;  %v2182_v28 = vadd.f32 %v3780_v25, %v4480_v55  ;;  %v1454_v30 = vadd.f32 %v4524_v43, %v3730_v24 }
 0x1d2   : > { %v1448_v31 = vpop.f32.mrf.mxu0  ;;  %v2176_v32 = vpop.f32.mrf.mxu1 }
 0x1d3   : > { %2838 = vst.msk [vmem:[%s4491_s23 + $0xc0] sm:$0xff] %vm2813_vm1, %v2709_v27  ;;  %v2712_v33 = vmax.f32 %v2182_v28, 0.0  ;;  %v1449_v34 = vadd.f32 %v4524_v43, %v1448_v31  ;;  %v2177_v35 = vadd.f32 %v4480_v55, %v2176_v32  ;;  %3925 = vmatprep.mubr.msk.f32.mxu1 %vm367_vm0, %v1581_v26  ;;  %v1584_v40 = vmax.f32 %v1454_v30, 0.0 }
 0x1d4   : > { %v3783_v36 = vpop.f32.mrf.mxu1  ;;  %3926 = vmatmul.mubr.msk.f32.gmra.mxu1 %vm367_vm0, %v1582_v29 }
 0x1d5   : > { %2841 = vst.msk [vmem:[%s4491_s23 + $0xd8] sm:$0xff] %vm2813_vm1, %v2712_v33  ;;  %v1583_v37 = vmax.f32 %v1449_v34, 0.0  ;;  %v2711_v38 = vmax.f32 %v2177_v35, 0.0  ;;  %v2192_v39 = vadd.f32 %v3783_v36, %v4480_v55 }
 0x1d6   : > { %v2186_v41 = vpop.f32.mrf.mxu1 }
 0x1d7   : > { %2840 = vst.msk [vmem:[%s4491_s23 + $0xd0] sm:$0xff] %vm2813_vm1, %v2711_v38  ;;  %v2714_v43 = vmax.f32 %v2192_v39, 0.0  ;;  %v2187_v42 = vadd.f32 %v4480_v55, %v2186_v41  ;;  %3928 = vmatprep.mubr.msk.f32.mxu1 %vm367_vm0, %v1583_v37 }
 0x1d8   : > { %v3786_v44 = vpop.f32.mrf.mxu1  ;;  %3929 = vmatmul.mubr.msk.f32.gmra.mxu1 %vm367_vm0, %v1584_v40 }
 0x1d9   : > { %2843 = vst.msk [vmem:[%s4491_s23 + $0xe8] sm:$0xff] %vm2813_vm1, %v2714_v43  ;;  %v2713_v45 = vmax.f32 %v2187_v42, 0.0  ;;  %v2202_v46 = vadd.f32 %v3786_v44, %v4480_v55 }
 0x1da   : > { %v2196_v47 = vpop.f32.mrf.mxu1 }
 0x1db   : > { %2842 = vst.msk [vmem:[%s4491_s23 + $0xe0] sm:$0xff] %vm2813_vm1, %v2713_v45  ;;  %v2716_v48 = vmax.f32 %v2202_v46, 0.0  ;;  %v2197_v49 = vadd.f32 %v4480_v55, %v2196_v47 }
 0x1dc   : > { %v3789_v50 = vpop.f32.mrf.mxu1 }
 0x1dd   : > { %2845 = vst.msk [vmem:[%s4491_s23 + $0xf8] sm:$0xff] %vm2813_vm1, %v2716_v48  ;;  %v2715_v51 = vmax.f32 %v2197_v49, 0.0  ;;  %v2212_v52 = vadd.f32 %v3789_v50, %v4480_v55 }
 0x1de   : > { %v2206_v53 = vpop.f32.mrf.mxu1 }
 0x1df   : > { %2844 = vst.msk [vmem:[%s4491_s23 + $0xf0] sm:$0xff] %vm2813_vm1, %v2715_v51  ;;  %v2718_v54 = vmax.f32 %v2212_v52, 0.0  ;;  %v2207_v56 = vadd.f32 %v4480_v55, %v2206_v53 }
 0x1e0   : > { %v3792_v57 = vpop.f32.mrf.mxu1 }
 0x1e1   : > { %2847 = vst.msk [vmem:[%s4491_s23 + $0x108] sm:$0xff] %vm2813_vm1, %v2718_v54  ;;  %v2717_v58 = vmax.f32 %v2207_v56, 0.0  ;;  %v2222_v59 = vadd.f32 %v3792_v57, %v4480_v55 }
 0x1e2   : > { %v2216_v60 = vpop.f32.mrf.mxu1 }
 0x1e3   : > { %2846 = vst.msk [vmem:[%s4491_s23 + $0x100] sm:$0xff] %vm2813_vm1, %v2717_v58  ;;  %v2720_v61 = vmax.f32 %v2222_v59, 0.0  ;;  %v2217_v62 = vadd.f32 %v4480_v55, %v2216_v60 }
 0x1e4   : > { %v3795_v63 = vpop.f32.mrf.mxu1 }
 0x1e5   : > { %2849 = vst.msk [vmem:[%s4491_s23 + $0x118] sm:$0xff] %vm2813_vm1, %v2720_v61  ;;  %v2719_v0 = vmax.f32 %v2217_v62, 0.0  ;;  %v2232_v1 = vadd.f32 %v3795_v63, %v4480_v55 }
 0x1e6   : > { %v2226_v2 = vpop.f32.mrf.mxu1 }
 0x1e7   : > { %2848 = vst.msk [vmem:[%s4491_s23 + $0x110] sm:$0xff] %vm2813_vm1, %v2719_v0  ;;  %v2722_v3 = vmax.f32 %v2232_v1, 0.0  ;;  %v2227_v4 = vadd.f32 %v4480_v55, %v2226_v2 }
 0x1e8   : > { %v3798_v5 = vpop.f32.mrf.mxu1 }
 0x1e9   : > { %2851 = vst.msk [vmem:[%s4491_s23 + $0x128] sm:$0xff] %vm2813_vm1, %v2722_v3  ;;  %v2721_v6 = vmax.f32 %v2227_v4, 0.0  ;;  %v2242_v7 = vadd.f32 %v3798_v5, %v4480_v55 }
 0x1ea   : > { %v2236_v8 = vpop.f32.mrf.mxu1 }
 0x1eb   : > { %2850 = vst.msk [vmem:[%s4491_s23 + $0x120] sm:$0xff] %vm2813_vm1, %v2721_v6  ;;  %v2724_v9 = vmax.f32 %v2242_v7, 0.0  ;;  %v2237_v10 = vadd.f32 %v4480_v55, %v2236_v8 }
 0x1ec   : > { %v3801_v11 = vpop.f32.mrf.mxu1 }
 0x1ed   : > { %2853 = vst.msk [vmem:[%s4491_s23 + $0x138] sm:$0xff] %vm2813_vm1, %v2724_v9  ;;  %v2723_v12 = vmax.f32 %v2237_v10, 0.0  ;;  %v2252_v13 = vadd.f32 %v3801_v11, %v4480_v55 }
 0x1ee   : > { %v2246_v14 = vpop.f32.mrf.mxu1 }
 0x1ef   : > { %2852 = vst.msk [vmem:[%s4491_s23 + $0x130] sm:$0xff] %vm2813_vm1, %v2723_v12  ;;  %v2726_v15 = vmax.f32 %v2252_v13, 0.0  ;;  %v2247_v16 = vadd.f32 %v4480_v55, %v2246_v14 }
 0x1f0   : > { %v3804_v17 = vpop.f32.mrf.mxu1 }
 0x1f1   : > { %2855 = vst.msk [vmem:[%s4491_s23 + $0x148] sm:$0xff] %vm2813_vm1, %v2726_v15  ;;  %v2725_v18 = vmax.f32 %v2247_v16, 0.0  ;;  %v2262_v19 = vadd.f32 %v3804_v17, %v4480_v55 }
 0x1f2   : > { %v2256_v20 = vpop.f32.mrf.mxu1 }
 0x1f3   : > { %2854 = vst.msk [vmem:[%s4491_s23 + $0x140] sm:$0xff] %vm2813_vm1, %v2725_v18  ;;  %v2728_v21 = vmax.f32 %v2262_v19, 0.0  ;;  %v2257_v22 = vadd.f32 %v4480_v55, %v2256_v20 }
 0x1f4   : > { %v3807_v23 = vpop.f32.mrf.mxu1 }
 0x1f5   : > { %2857 = vst.msk [vmem:[%s4491_s23 + $0x158] sm:$0xff] %vm2813_vm1, %v2728_v21  ;;  %v2727_v24 = vmax.f32 %v2257_v22, 0.0  ;;  %v2272_v25 = vadd.f32 %v3807_v23, %v4480_v55 }
 0x1f6   : > { %v2266_v26 = vpop.f32.mrf.mxu1 }
 0x1f7   : > { %2856 = vst.msk [vmem:[%s4491_s23 + $0x150] sm:$0xff] %vm2813_vm1, %v2727_v24  ;;  %v2730_v27 = vmax.f32 %v2272_v25, 0.0  ;;  %v2267_v28 = vadd.f32 %v4480_v55, %v2266_v26 }
 0x1f8   : > { %v3810_v29 = vpop.f32.mrf.mxu1 }
 0x1f9   : > { %2859 = vst.msk [vmem:[%s4491_s23 + $0x168] sm:$0xff] %vm2813_vm1, %v2730_v27  ;;  %v2729_v30 = vmax.f32 %v2267_v28, 0.0  ;;  %v2282_v31 = vadd.f32 %v3810_v29, %v4480_v55 }
 0x1fa   : > { %v2276_v32 = vpop.f32.mrf.mxu1 }
 0x1fb   : > { %2858 = vst.msk [vmem:[%s4491_s23 + $0x160] sm:$0xff] %vm2813_vm1, %v2729_v30  ;;  %v2732_v33 = vmax.f32 %v2282_v31, 0.0  ;;  %v2277_v34 = vadd.f32 %v4480_v55, %v2276_v32 }
 0x1fc   : > { %v3813_v35 = vpop.f32.mrf.mxu1 }
 0x1fd   : > { %2861 = vst.msk [vmem:[%s4491_s23 + $0x178] sm:$0xff] %vm2813_vm1, %v2732_v33  ;;  %v2731_v36 = vmax.f32 %v2277_v34, 0.0  ;;  %v2292_v37 = vadd.f32 %v3813_v35, %v4480_v55 }
 0x1fe   : > { %v2286_v38 = vpop.f32.mrf.mxu1 }
 0x1ff   : > { %2860 = vst.msk [vmem:[%s4491_s23 + $0x170] sm:$0xff] %vm2813_vm1, %v2731_v36  ;;  %v2734_v39 = vmax.f32 %v2292_v37, 0.0  ;;  %v2287_v40 = vadd.f32 %v4480_v55, %v2286_v38 }
 0x200   : > { %v3816_v41 = vpop.f32.mrf.mxu1 }
 0x201   : > { %2863 = vst.msk [vmem:[%s4491_s23 + $0x188] sm:$0xff] %vm2813_vm1, %v2734_v39  ;;  %v2733_v43 = vmax.f32 %v2287_v40, 0.0  ;;  %v2302_v42 = vadd.f32 %v3816_v41, %v4480_v55 }
 0x202   : > { %v2296_v44 = vpop.f32.mrf.mxu1 }
 0x203   : > { %2862 = vst.msk [vmem:[%s4491_s23 + $0x180] sm:$0xff] %vm2813_vm1, %v2733_v43  ;;  %v2736_v45 = vmax.f32 %v2302_v42, 0.0  ;;  %v2297_v46 = vadd.f32 %v4480_v55, %v2296_v44 }
 0x204   : > { %v3819_v47 = vpop.f32.mrf.mxu1 }
 0x205   : > { %2865 = vst.msk [vmem:[%s4491_s23 + $0x198] sm:$0xff] %vm2813_vm1, %v2736_v45  ;;  %v2735_v48 = vmax.f32 %v2297_v46, 0.0  ;;  %v2312_v49 = vadd.f32 %v3819_v47, %v4480_v55 }
 0x206   : > { %v2306_v50 = vpop.f32.mrf.mxu1 }
 0x207   : > { %2864 = vst.msk [vmem:[%s4491_s23 + $0x190] sm:$0xff] %vm2813_vm1, %v2735_v48  ;;  %v2738_v51 = vmax.f32 %v2312_v49, 0.0  ;;  %v2307_v52 = vadd.f32 %v4480_v55, %v2306_v50 }
 0x208   : > { %v3822_v53 = vpop.f32.mrf.mxu1 }
 0x209   : > { %2867 = vst.msk [vmem:[%s4491_s23 + $0x1a8] sm:$0xff] %vm2813_vm1, %v2738_v51  ;;  %v2737_v54 = vmax.f32 %v2307_v52, 0.0  ;;  %v2322_v56 = vadd.f32 %v3822_v53, %v4480_v55 }
 0x20a   : > { %v2316_v57 = vpop.f32.mrf.mxu1 }
 0x20b   : > { %2866 = vst.msk [vmem:[%s4491_s23 + $0x1a0] sm:$0xff] %vm2813_vm1, %v2737_v54  ;;  %v2740_v58 = vmax.f32 %v2322_v56, 0.0  ;;  %v2317_v59 = vadd.f32 %v4480_v55, %v2316_v57 }
 0x20c   : > { %v3825_v60 = vpop.f32.mrf.mxu1 }
 0x20d   : > { %2869 = vst.msk [vmem:[%s4491_s23 + $0x1b8] sm:$0xff] %vm2813_vm1, %v2740_v58  ;;  %v2739_v61 = vmax.f32 %v2317_v59, 0.0  ;;  %v2332_v62 = vadd.f32 %v3825_v60, %v4480_v55 }
 0x20e   : > { %v2326_v63 = vpop.f32.mrf.mxu1 }
 0x20f   : > { %2868 = vst.msk [vmem:[%s4491_s23 + $0x1b0] sm:$0xff] %vm2813_vm1, %v2739_v61  ;;  %v2742_v0 = vmax.f32 %v2332_v62, 0.0  ;;  %v2327_v1 = vadd.f32 %v4480_v55, %v2326_v63 }
 0x210   : > { %v3828_v2 = vpop.f32.mrf.mxu1 }
 0x211   : > { %2871 = vst.msk [vmem:[%s4491_s23 + $0x1c8] sm:$0xff] %vm2813_vm1, %v2742_v0  ;;  %v2741_v3 = vmax.f32 %v2327_v1, 0.0  ;;  %v2342_v4 = vadd.f32 %v3828_v2, %v4480_v55 }
 0x212   : > { %v2336_v5 = vpop.f32.mrf.mxu1 }
 0x213   : > { %2870 = vst.msk [vmem:[%s4491_s23 + $0x1c0] sm:$0xff] %vm2813_vm1, %v2741_v3  ;;  %v2744_v6 = vmax.f32 %v2342_v4, 0.0  ;;  %v2337_v7 = vadd.f32 %v4480_v55, %v2336_v5 }
 0x214   : > { %v3831_v8 = vpop.f32.mrf.mxu1 }
 0x215   : > { %2873 = vst.msk [vmem:[%s4491_s23 + $0x1d8] sm:$0xff] %vm2813_vm1, %v2744_v6  ;;  %v2743_v9 = vmax.f32 %v2337_v7, 0.0  ;;  %v2352_v10 = vadd.f32 %v3831_v8, %v4480_v55 }
 0x216   : > { %v2346_v11 = vpop.f32.mrf.mxu1 }
 0x217   : > { %2872 = vst.msk [vmem:[%s4491_s23 + $0x1d0] sm:$0xff] %vm2813_vm1, %v2743_v9  ;;  %v2746_v12 = vmax.f32 %v2352_v10, 0.0  ;;  %v2347_v13 = vadd.f32 %v4480_v55, %v2346_v11 }
 0x218   : > { %v3834_v14 = vpop.f32.mrf.mxu1 }
 0x219   : > { %2875 = vst.msk [vmem:[%s4491_s23 + $0x1e8] sm:$0xff] %vm2813_vm1, %v2746_v12  ;;  %v2745_v15 = vmax.f32 %v2347_v13, 0.0  ;;  %v2362_v16 = vadd.f32 %v3834_v14, %v4480_v55 }
 0x21a   : > { %v2356_v17 = vpop.f32.mrf.mxu1 }
 0x21b   : > { %2874 = vst.msk [vmem:[%s4491_s23 + $0x1e0] sm:$0xff] %vm2813_vm1, %v2745_v15  ;;  %v2748_v18 = vmax.f32 %v2362_v16, 0.0  ;;  %v2357_v19 = vadd.f32 %v4480_v55, %v2356_v17 }
 0x21c   : > { %v3837_v20 = vpop.f32.mrf.mxu1 }
 0x21d   : > { %2877 = vst.msk [vmem:[%s4491_s23 + $0x1f8] sm:$0xff] %vm2813_vm1, %v2748_v18  ;;  %v2747_v21 = vmax.f32 %v2357_v19, 0.0  ;;  %v2372_v22 = vadd.f32 %v3837_v20, %v4480_v55 }
 0x21e   : > { %v2366_v23 = vpop.f32.mrf.mxu1 }
 0x21f   : > { %2876 = vst.msk [vmem:[%s4491_s23 + $0x1f0] sm:$0xff] %vm2813_vm1, %v2747_v21  ;;  %v2750_v24 = vmax.f32 %v2372_v22, 0.0  ;;  %v2367_v25 = vadd.f32 %v4480_v55, %v2366_v23 }
 0x220   : > { %v3840_v26 = vpop.f32.mrf.mxu1 }
 0x221   : > { %2879 = vst.msk [vmem:[%s4491_s23 + $0x208] sm:$0xff] %vm2813_vm1, %v2750_v24  ;;  %v2749_v27 = vmax.f32 %v2367_v25, 0.0  ;;  %v2382_v28 = vadd.f32 %v3840_v26, %v4480_v55 }
 0x222   : > { %v2376_v29 = vpop.f32.mrf.mxu1 }
 0x223   : > { %2878 = vst.msk [vmem:[%s4491_s23 + $0x200] sm:$0xff] %vm2813_vm1, %v2749_v27  ;;  %v2752_v30 = vmax.f32 %v2382_v28, 0.0  ;;  %v2377_v31 = vadd.f32 %v4480_v55, %v2376_v29 }
 0x224   : > { %v3843_v32 = vpop.f32.mrf.mxu1 }
 0x225   : > { %2881 = vst.msk [vmem:[%s4491_s23 + $0x218] sm:$0xff] %vm2813_vm1, %v2752_v30  ;;  %v2751_v33 = vmax.f32 %v2377_v31, 0.0  ;;  %v2392_v34 = vadd.f32 %v3843_v32, %v4480_v55 }
 0x226   : > { %v2386_v35 = vpop.f32.mrf.mxu1 }
 0x227   : > { %2880 = vst.msk [vmem:[%s4491_s23 + $0x210] sm:$0xff] %vm2813_vm1, %v2751_v33  ;;  %v2754_v36 = vmax.f32 %v2392_v34, 0.0  ;;  %v2387_v37 = vadd.f32 %v4480_v55, %v2386_v35 }
 0x228   : > { %v3846_v38 = vpop.f32.mrf.mxu1 }
 0x229   : > { %2883 = vst.msk [vmem:[%s4491_s23 + $0x228] sm:$0xff] %vm2813_vm1, %v2754_v36  ;;  %v2753_v39 = vmax.f32 %v2387_v37, 0.0  ;;  %v2402_v40 = vadd.f32 %v3846_v38, %v4480_v55 }
 0x22a   : > { %v2396_v41 = vpop.f32.mrf.mxu1 }
 0x22b   : > { %2882 = vst.msk [vmem:[%s4491_s23 + $0x220] sm:$0xff] %vm2813_vm1, %v2753_v39  ;;  %v2756_v43 = vmax.f32 %v2402_v40, 0.0  ;;  %v2397_v42 = vadd.f32 %v4480_v55, %v2396_v41 }
 0x22c   : > { %v3849_v44 = vpop.f32.mrf.mxu1 }
 0x22d   : > { %2885 = vst.msk [vmem:[%s4491_s23 + $0x238] sm:$0xff] %vm2813_vm1, %v2756_v43  ;;  %v2755_v45 = vmax.f32 %v2397_v42, 0.0  ;;  %v2412_v46 = vadd.f32 %v3849_v44, %v4480_v55 }
 0x22e   : > { %v2406_v47 = vpop.f32.mrf.mxu1 }
 0x22f   : > { %2884 = vst.msk [vmem:[%s4491_s23 + $0x230] sm:$0xff] %vm2813_vm1, %v2755_v45  ;;  %v2758_v48 = vmax.f32 %v2412_v46, 0.0  ;;  %v2407_v49 = vadd.f32 %v4480_v55, %v2406_v47 }
 0x230   : > { %v3852_v50 = vpop.f32.mrf.mxu1 }
 0x231   : > { %2887 = vst.msk [vmem:[%s4491_s23 + $0x248] sm:$0xff] %vm2813_vm1, %v2758_v48  ;;  %v2757_v51 = vmax.f32 %v2407_v49, 0.0  ;;  %v2422_v52 = vadd.f32 %v3852_v50, %v4480_v55 }
 0x232   : > { %v2416_v53 = vpop.f32.mrf.mxu1 }
 0x233   : > { %2886 = vst.msk [vmem:[%s4491_s23 + $0x240] sm:$0xff] %vm2813_vm1, %v2757_v51  ;;  %v2760_v54 = vmax.f32 %v2422_v52, 0.0  ;;  %v2417_v56 = vadd.f32 %v4480_v55, %v2416_v53 }
 0x234   : > { %v3855_v57 = vpop.f32.mrf.mxu1 }
 0x235   : > { %2889 = vst.msk [vmem:[%s4491_s23 + $0x258] sm:$0xff] %vm2813_vm1, %v2760_v54  ;;  %v2759_v58 = vmax.f32 %v2417_v56, 0.0  ;;  %v2432_v59 = vadd.f32 %v3855_v57, %v4480_v55 }
 0x236   : > { %v2426_v60 = vpop.f32.mrf.mxu1 }
 0x237   : > { %2888 = vst.msk [vmem:[%s4491_s23 + $0x250] sm:$0xff] %vm2813_vm1, %v2759_v58  ;;  %v2762_v61 = vmax.f32 %v2432_v59, 0.0  ;;  %v2427_v62 = vadd.f32 %v4480_v55, %v2426_v60 }
 0x238   : > { %v3858_v63 = vpop.f32.mrf.mxu1 }
 0x239   : > { %2891 = vst.msk [vmem:[%s4491_s23 + $0x268] sm:$0xff] %vm2813_vm1, %v2762_v61  ;;  %v2761_v0 = vmax.f32 %v2427_v62, 0.0  ;;  %v2442_v1 = vadd.f32 %v3858_v63, %v4480_v55  ;;  %v4850_v62 = vld [vmem:[%s4951_s4] ss:$0 sm:$0xff] }
 0x23a   : > { %v2436_v2 = vpop.f32.mrf.mxu1 }
 0x23b   : > { %2890 = vst.msk [vmem:[%s4491_s23 + $0x260] sm:$0xff] %vm2813_vm1, %v2761_v0  ;;  %v2764_v3 = vmax.f32 %v2442_v1, 0.0  ;;  %v2437_v4 = vadd.f32 %v4480_v55, %v2436_v2 }
 0x23c   : > { %v3861_v5 = vpop.f32.mrf.mxu1 }
 0x23d   : > { %2893 = vst.msk [vmem:[%s4491_s23 + $0x278] sm:$0xff] %vm2813_vm1, %v2764_v3  ;;  %v2763_v6 = vmax.f32 %v2437_v4, 0.0  ;;  %v2452_v7 = vadd.f32 %v3861_v5, %v4480_v55 }
 0x23e   : > { %v2446_v8 = vpop.f32.mrf.mxu1 }
 0x23f   : > { %2892 = vst.msk [vmem:[%s4491_s23 + $0x270] sm:$0xff] %vm2813_vm1, %v2763_v6  ;;  %v2766_v9 = vmax.f32 %v2452_v7, 0.0  ;;  %v2447_v10 = vadd.f32 %v4480_v55, %v2446_v8 }
 0x240   : > { %v3864_v11 = vpop.f32.mrf.mxu1 }
 0x241   : > { %2895 = vst.msk [vmem:[%s4491_s23 + $0x288] sm:$0xff] %vm2813_vm1, %v2766_v9  ;;  %v2765_v12 = vmax.f32 %v2447_v10, 0.0  ;;  %v2462_v13 = vadd.f32 %v3864_v11, %v4480_v55 }
 0x242   : > { %v2456_v14 = vpop.f32.mrf.mxu1 }
 0x243   : > { %2894 = vst.msk [vmem:[%s4491_s23 + $0x280] sm:$0xff] %vm2813_vm1, %v2765_v12  ;;  %v2768_v15 = vmax.f32 %v2462_v13, 0.0  ;;  %v2457_v16 = vadd.f32 %v4480_v55, %v2456_v14 }
 0x244   : > { %v3867_v17 = vpop.f32.mrf.mxu1 }
 0x245   : > { %2897 = vst.msk [vmem:[%s4491_s23 + $0x298] sm:$0xff] %vm2813_vm1, %v2768_v15  ;;  %v2767_v18 = vmax.f32 %v2457_v16, 0.0  ;;  %v2472_v19 = vadd.f32 %v3867_v17, %v4480_v55 }
 0x246   : > { %v2466_v20 = vpop.f32.mrf.mxu1 }
 0x247   : > { %2896 = vst.msk [vmem:[%s4491_s23 + $0x290] sm:$0xff] %vm2813_vm1, %v2767_v18  ;;  %v2770_v21 = vmax.f32 %v2472_v19, 0.0  ;;  %v2467_v22 = vadd.f32 %v4480_v55, %v2466_v20 }
 0x248   : > { %v3870_v23 = vpop.f32.mrf.mxu1 }
 0x249   : > { %2899 = vst.msk [vmem:[%s4491_s23 + $0x2a8] sm:$0xff] %vm2813_vm1, %v2770_v21  ;;  %v2769_v24 = vmax.f32 %v2467_v22, 0.0  ;;  %v2482_v25 = vadd.f32 %v3870_v23, %v4480_v55 }
 0x24a   : > { %v2476_v26 = vpop.f32.mrf.mxu1 }
 0x24b   : > { %2898 = vst.msk [vmem:[%s4491_s23 + $0x2a0] sm:$0xff] %vm2813_vm1, %v2769_v24  ;;  %v2772_v27 = vmax.f32 %v2482_v25, 0.0  ;;  %v2477_v28 = vadd.f32 %v4480_v55, %v2476_v26 }
 0x24c   : > { %v3873_v29 = vpop.f32.mrf.mxu1 }
 0x24d   : > { %2901 = vst.msk [vmem:[%s4491_s23 + $0x2b8] sm:$0xff] %vm2813_vm1, %v2772_v27  ;;  %v2771_v30 = vmax.f32 %v2477_v28, 0.0  ;;  %v2492_v31 = vadd.f32 %v3873_v29, %v4480_v55 }
 0x24e   : > { %v2486_v32 = vpop.f32.mrf.mxu1 }
 0x24f   : > { %2900 = vst.msk [vmem:[%s4491_s23 + $0x2b0] sm:$0xff] %vm2813_vm1, %v2771_v30  ;;  %v2774_v33 = vmax.f32 %v2492_v31, 0.0  ;;  %v2487_v34 = vadd.f32 %v4480_v55, %v2486_v32 }
 0x250   : > { %v3876_v35 = vpop.f32.mrf.mxu1 }
 0x251   : > { %2903 = vst.msk [vmem:[%s4491_s23 + $0x2c8] sm:$0xff] %vm2813_vm1, %v2774_v33  ;;  %v2773_v36 = vmax.f32 %v2487_v34, 0.0  ;;  %v2502_v37 = vadd.f32 %v3876_v35, %v4480_v55 }
 0x252   : > { %v2496_v38 = vpop.f32.mrf.mxu1 }
 0x253   : > { %2902 = vst.msk [vmem:[%s4491_s23 + $0x2c0] sm:$0xff] %vm2813_vm1, %v2773_v36  ;;  %v2776_v39 = vmax.f32 %v2502_v37, 0.0  ;;  %v2497_v40 = vadd.f32 %v4480_v55, %v2496_v38 }
 0x254   : > { %v3879_v41 = vpop.f32.mrf.mxu1 }
 0x255   : > { %2905 = vst.msk [vmem:[%s4491_s23 + $0x2d8] sm:$0xff] %vm2813_vm1, %v2776_v39  ;;  %v2775_v43 = vmax.f32 %v2497_v40, 0.0  ;;  %v2512_v42 = vadd.f32 %v3879_v41, %v4480_v55 }
 0x256   : > { %v2506_v44 = vpop.f32.mrf.mxu1 }
 0x257   : > { %2904 = vst.msk [vmem:[%s4491_s23 + $0x2d0] sm:$0xff] %vm2813_vm1, %v2775_v43  ;;  %v2778_v45 = vmax.f32 %v2512_v42, 0.0  ;;  %v2507_v46 = vadd.f32 %v4480_v55, %v2506_v44 }
 0x258   : > { %v3882_v47 = vpop.f32.mrf.mxu1 }
 0x259   : > { %2907 = vst.msk [vmem:[%s4491_s23 + $0x2e8] sm:$0xff] %vm2813_vm1, %v2778_v45  ;;  %v2777_v48 = vmax.f32 %v2507_v46, 0.0  ;;  %v2522_v49 = vadd.f32 %v3882_v47, %v4480_v55 }
 0x25a   : > { %v2516_v50 = vpop.f32.mrf.mxu1 }
 0x25b   : > { %2906 = vst.msk [vmem:[%s4491_s23 + $0x2e0] sm:$0xff] %vm2813_vm1, %v2777_v48  ;;  %v2780_v51 = vmax.f32 %v2522_v49, 0.0  ;;  %v2517_v52 = vadd.f32 %v4480_v55, %v2516_v50 }
 0x25c   : > { %v3885_v53 = vpop.f32.mrf.mxu1 }
 0x25d   : > { %2909 = vst.msk [vmem:[%s4491_s23 + $0x2f8] sm:$0xff] %vm2813_vm1, %v2780_v51  ;;  %v2779_v54 = vmax.f32 %v2517_v52, 0.0  ;;  %v2532_v56 = vadd.f32 %v3885_v53, %v4480_v55 }
 0x25e   : > { %v2526_v57 = vpop.f32.mrf.mxu1 }
 0x25f   : > { %2908 = vst.msk [vmem:[%s4491_s23 + $0x2f0] sm:$0xff] %vm2813_vm1, %v2779_v54  ;;  %v2782_v58 = vmax.f32 %v2532_v56, 0.0  ;;  %v2527_v59 = vadd.f32 %v4480_v55, %v2526_v57 }
 0x260   : > { %v3888_v60 = vpop.f32.mrf.mxu1 }
 0x261   : > { %2911 = vst.msk [vmem:[%s4491_s23 + $0x308] sm:$0xff] %vm2813_vm1, %v2782_v58  ;;  %v2781_v61 = vmax.f32 %v2527_v59, 0.0  ;;  %v2542_v63 = vadd.f32 %v4850_v62, %v3888_v60 }
 0x262   : > { %v2536_v0 = vpop.f32.mrf.mxu1 }
 0x263   : > { %2910 = vst.msk [vmem:[%s4491_s23 + $0x300] sm:$0xff] %vm2813_vm1, %v2781_v61  ;;  %v2784_v1 = vmax.f32 %v2542_v63, 0.0  ;;  %v2537_v2 = vadd.f32 %v4850_v62, %v2536_v0 }
 0x264   : > { %v3891_v55 = vpop.f32.mrf.mxu1 }
 0x265   : > { %2913 = vst.msk [vmem:[%s4491_s23 + $0x318] sm:$0xff] %vm2813_vm1, %v2784_v1  ;;  %v2783_v3 = vmax.f32 %v2537_v2, 0.0  ;;  %v2552_v4 = vadd.f32 %v4850_v62, %v3891_v55 }
 0x266   : > { %v2546_v5 = vpop.f32.mrf.mxu1 }
 0x267   : > { %2912 = vst.msk [vmem:[%s4491_s23 + $0x310] sm:$0xff] %vm2813_vm1, %v2783_v3  ;;  %v2786_v6 = vmax.f32 %v2552_v4, 0.0  ;;  %v2547_v7 = vadd.f32 %v4850_v62, %v2546_v5 }
 0x268   : > { %v3894_v8 = vpop.f32.mrf.mxu1 }
 0x269   : > { %2915 = vst.msk [vmem:[%s4491_s23 + $0x328] sm:$0xff] %vm2813_vm1, %v2786_v6  ;;  %v2785_v9 = vmax.f32 %v2547_v7, 0.0  ;;  %v2562_v10 = vadd.f32 %v4850_v62, %v3894_v8 }
 0x26a   : > { %v2556_v11 = vpop.f32.mrf.mxu1 }
 0x26b   : > { %2914 = vst.msk [vmem:[%s4491_s23 + $0x320] sm:$0xff] %vm2813_vm1, %v2785_v9  ;;  %v2788_v12 = vmax.f32 %v2562_v10, 0.0  ;;  %v2557_v13 = vadd.f32 %v4850_v62, %v2556_v11 }
 0x26c   : > { %v3897_v14 = vpop.f32.mrf.mxu1 }
 0x26d   : > { %2917 = vst.msk [vmem:[%s4491_s23 + $0x338] sm:$0xff] %vm2813_vm1, %v2788_v12  ;;  %v2787_v15 = vmax.f32 %v2557_v13, 0.0  ;;  %v2572_v16 = vadd.f32 %v4850_v62, %v3897_v14 }
 0x26e   : > { %v2566_v17 = vpop.f32.mrf.mxu1 }
 0x26f   : > { %2916 = vst.msk [vmem:[%s4491_s23 + $0x330] sm:$0xff] %vm2813_vm1, %v2787_v15  ;;  %v2790_v18 = vmax.f32 %v2572_v16, 0.0  ;;  %v2567_v19 = vadd.f32 %v4850_v62, %v2566_v17 }
 0x270   : > { %v3900_v20 = vpop.f32.mrf.mxu1 }
 0x271   : > { %2919 = vst.msk [vmem:[%s4491_s23 + $0x348] sm:$0xff] %vm2813_vm1, %v2790_v18  ;;  %v2789_v21 = vmax.f32 %v2567_v19, 0.0  ;;  %v2582_v22 = vadd.f32 %v4850_v62, %v3900_v20 }
 0x272   : > { %v2576_v23 = vpop.f32.mrf.mxu1 }
 0x273   : > { %2918 = vst.msk [vmem:[%s4491_s23 + $0x340] sm:$0xff] %vm2813_vm1, %v2789_v21  ;;  %v2792_v24 = vmax.f32 %v2582_v22, 0.0  ;;  %v2577_v25 = vadd.f32 %v4850_v62, %v2576_v23 }
 0x274   : > { %v3903_v26 = vpop.f32.mrf.mxu1 }
 0x275   : > { %2921 = vst.msk [vmem:[%s4491_s23 + $0x358] sm:$0xff] %vm2813_vm1, %v2792_v24  ;;  %v2791_v27 = vmax.f32 %v2577_v25, 0.0  ;;  %v2592_v28 = vadd.f32 %v4850_v62, %v3903_v26 }
 0x276   : > { %v2586_v29 = vpop.f32.mrf.mxu1 }
 0x277   : > { %2920 = vst.msk [vmem:[%s4491_s23 + $0x350] sm:$0xff] %vm2813_vm1, %v2791_v27  ;;  %v2794_v30 = vmax.f32 %v2592_v28, 0.0  ;;  %v2587_v31 = vadd.f32 %v4850_v62, %v2586_v29 }
 0x278   : > { %v3906_v32 = vpop.f32.mrf.mxu1 }
 0x279   : > { %2923 = vst.msk [vmem:[%s4491_s23 + $0x368] sm:$0xff] %vm2813_vm1, %v2794_v30  ;;  %v2793_v33 = vmax.f32 %v2587_v31, 0.0  ;;  %v2602_v34 = vadd.f32 %v4850_v62, %v3906_v32 }
 0x27a   : > { %v2596_v35 = vpop.f32.mrf.mxu1 }
 0x27b   : > { %2922 = vst.msk [vmem:[%s4491_s23 + $0x360] sm:$0xff] %vm2813_vm1, %v2793_v33  ;;  %v2796_v36 = vmax.f32 %v2602_v34, 0.0  ;;  %v2597_v37 = vadd.f32 %v4850_v62, %v2596_v35 }
 0x27c   : > { %v3909_v38 = vpop.f32.mrf.mxu1 }
 0x27d   : > { %2925 = vst.msk [vmem:[%s4491_s23 + $0x378] sm:$0xff] %vm2813_vm1, %v2796_v36  ;;  %v2795_v39 = vmax.f32 %v2597_v37, 0.0  ;;  %v2612_v40 = vadd.f32 %v4850_v62, %v3909_v38 }
 0x27e   : > { %v2606_v41 = vpop.f32.mrf.mxu1 }
 0x27f   : > { %2924 = vst.msk [vmem:[%s4491_s23 + $0x370] sm:$0xff] %vm2813_vm1, %v2795_v39  ;;  %v2798_v43 = vmax.f32 %v2612_v40, 0.0  ;;  %v2607_v42 = vadd.f32 %v4850_v62, %v2606_v41 }
 0x280   : > { %v3912_v44 = vpop.f32.mrf.mxu1 }
 0x281   : > { %2927 = vst.msk [vmem:[%s4491_s23 + $0x388] sm:$0xff] %vm2813_vm1, %v2798_v43  ;;  %v2797_v45 = vmax.f32 %v2607_v42, 0.0  ;;  %v2622_v46 = vadd.f32 %v4850_v62, %v3912_v44 }
 0x282   : > { %v2616_v47 = vpop.f32.mrf.mxu1 }
 0x283   : > { %2926 = vst.msk [vmem:[%s4491_s23 + $0x380] sm:$0xff] %vm2813_vm1, %v2797_v45  ;;  %v2800_v48 = vmax.f32 %v2622_v46, 0.0  ;;  %v2617_v49 = vadd.f32 %v4850_v62, %v2616_v47 }
 0x284   : > { %v3915_v50 = vpop.f32.mrf.mxu1 }
 0x285   : > { %2929 = vst.msk [vmem:[%s4491_s23 + $0x398] sm:$0xff] %vm2813_vm1, %v2800_v48  ;;  %v2799_v51 = vmax.f32 %v2617_v49, 0.0  ;;  %v2632_v52 = vadd.f32 %v4850_v62, %v3915_v50 }
 0x286   : > { %v2626_v53 = vpop.f32.mrf.mxu1 }
 0x287   : > { %2928 = vst.msk [vmem:[%s4491_s23 + $0x390] sm:$0xff] %vm2813_vm1, %v2799_v51  ;;  %v2802_v54 = vmax.f32 %v2632_v52, 0.0  ;;  %v2627_v56 = vadd.f32 %v4850_v62, %v2626_v53 }
 0x288   : > { %v3918_v57 = vpop.f32.mrf.mxu1 }
 0x289   : > { %2931 = vst.msk [vmem:[%s4491_s23 + $0x3a8] sm:$0xff] %vm2813_vm1, %v2802_v54  ;;  %v2801_v58 = vmax.f32 %v2627_v56, 0.0  ;;  %v2642_v59 = vadd.f32 %v4850_v62, %v3918_v57 }
 0x28a   : > { %v2636_v60 = vpop.f32.mrf.mxu1 }
 0x28b   : > { %2930 = vst.msk [vmem:[%s4491_s23 + $0x3a0] sm:$0xff] %vm2813_vm1, %v2801_v58  ;;  %v2804_v61 = vmax.f32 %v2642_v59, 0.0  ;;  %v2637_v63 = vadd.f32 %v4850_v62, %v2636_v60 }
 0x28c   : > { %v3921_v0 = vpop.f32.mrf.mxu1 }
 0x28d   : > { %2933 = vst.msk [vmem:[%s4491_s23 + $0x3b8] sm:$0xff] %vm2813_vm1, %v2804_v61  ;;  %v2803_v1 = vmax.f32 %v2637_v63, 0.0  ;;  %v2652_v2 = vadd.f32 %v4850_v62, %v3921_v0 }
 0x28e   : > { %v2646_v55 = vpop.f32.mrf.mxu1 }
 0x28f   : > { %2932 = vst.msk [vmem:[%s4491_s23 + $0x3b0] sm:$0xff] %vm2813_vm1, %v2803_v1  ;;  %v2806_v3 = vmax.f32 %v2652_v2, 0.0  ;;  %v2647_v4 = vadd.f32 %v4850_v62, %v2646_v55 }
 0x290   : > { %v3924_v5 = vpop.f32.mrf.mxu1 }
 0x291   : > { %2935 = vst.msk [vmem:[%s4491_s23 + $0x3c8] sm:$0xff] %vm2813_vm1, %v2806_v3  ;;  %v2805_v6 = vmax.f32 %v2647_v4, 0.0  ;;  %v2662_v7 = vadd.f32 %v4850_v62, %v3924_v5 }
 0x292   : > { %v2656_v8 = vpop.f32.mrf.mxu1 }
 0x293   : > { %2934 = vst.msk [vmem:[%s4491_s23 + $0x3c0] sm:$0xff] %vm2813_vm1, %v2805_v6  ;;  %v2808_v9 = vmax.f32 %v2662_v7, 0.0  ;;  %v2657_v10 = vadd.f32 %v4850_v62, %v2656_v8 }
 0x294   : > { %v3927_v11 = vpop.f32.mrf.mxu1 }
 0x295   : > { %2937 = vst.msk [vmem:[%s4491_s23 + $0x3d8] sm:$0xff] %vm2813_vm1, %v2808_v9  ;;  %v2807_v12 = vmax.f32 %v2657_v10, 0.0  ;;  %v2672_v13 = vadd.f32 %v4850_v62, %v3927_v11 }
 0x296   : > { %v2666_v14 = vpop.f32.mrf.mxu1 }
 0x297   : > { %2936 = vst.msk [vmem:[%s4491_s23 + $0x3d0] sm:$0xff] %vm2813_vm1, %v2807_v12  ;;  %v2810_v15 = vmax.f32 %v2672_v13, 0.0  ;;  %v2667_v16 = vadd.f32 %v4850_v62, %v2666_v14 }
 0x298   : > { %v3930_v17 = vpop.f32.mrf.mxu1 }
 0x299   : > { %2939 = vst.msk [vmem:[%s4491_s23 + $0x3e8] sm:$0xff] %vm2813_vm1, %v2810_v15  ;;  %v2809_v18 = vmax.f32 %v2667_v16, 0.0  ;;  %v2682_v19 = vadd.f32 %v4850_v62, %v3930_v17 }
 0x29a   : > { %v2676_v20 = vpop.f32.mrf.mxu1 }
 0x29b   : > { %2938 = vst.msk [vmem:[%s4491_s23 + $0x3e0] sm:$0xff] %vm2813_vm1, %v2809_v18  ;;  %v2812_v21 = vmax.f32 %v2682_v19, 0.0  ;;  %v2677_v22 = vadd.f32 %v4850_v62, %v2676_v20 }
 0x29d   : > { %2941 = vst.msk [vmem:[%s4491_s23 + $0x3f8] sm:$0xff] %vm2813_vm1, %v2812_v21  ;;  %v2811_v23 = vmax.f32 %v2677_v22, 0.0 }
 0x29f   : > { %2940 = vst.msk [vmem:[%s4491_s23 + $0x3f0] sm:$0xff] %vm2813_vm1, %v2811_v23 }
 0x2a0 PF: > { %s15_s18 = sadd.s32 1, %s3947_s18  }
 0x2a1   : > { %p12_p4 = scmp.ge.s32.totalorder %s15_s18, 4  }
 0x2a3   :  { %14 = sbr.rel (!%p12_p4) target bundleno = 1 (0x1), region = 70 }

</bundles_post_ra>
